<compile_context>
chip_gen: v6e
topology: v6e:2x2x1
jax: 0.10.0
libtpu: 0.0.40
codegen_flags: <defaults>
</compile_context>

<pallas_src>
import jax
import jax.numpy as jnp
from jax.experimental import pallas as pl
from jax.experimental.pallas import tpu as pltpu


_VMEM = pl.BlockSpec(memory_space=pltpu.MemorySpace.VMEM)


# ------------------------------ fused kernel ------------------------------- #

def _make_fused_kernel(T, B, BP, L, H, n_feat):
    LH = L * H               # fused state width (all layers of one stack)
    Fa = n_feat + 1          # features + ones column (carries all biases)
    TW = T + L - 1           # wavefront steps per stack
    TWBP = TW * BP

    def kernel(x_ref, w_in_ref, w_o2_ref, w_big_ref, w_head_ref, haux_ref,
               out_ref, gbuf, o2buf):
        # ---- hoisted layer-0 projections + biases: one matmul per stack -------
        # x_ref: (TW*BP, Fa); w_in_ref: (3*Fa, LH); gbuf: (3*TW*BP, LH)
        for si in range(3):
            w = w_in_ref[pl.ds(si * Fa, Fa), :]
            gbuf[pl.ds(si * TWBP, TWBP), :] = jnp.dot(
                x_ref[...], w, preferred_element_type=jnp.float32)

        # ---- wavefront recurrence over one L-layer stack -----------------------
        # State S at step s holds [h^0_s | h^1_{s-1} | ... | h^{L-1}_{s-L+1}].
        # W_big is block-upper-triangular: diag blocks = W_hh^l, super-diag = W_ih^l.
        def run_stack(si, h_init, seq_ref, need_finals):
            wbig = w_big_ref[pl.ds(si * LH, LH), :]            # (LH, LH)
            if h_init is None:
                S = jnp.zeros((BP, LH), jnp.float32)
            else:
                S = jnp.concatenate(h_init, axis=1)
            finals = [None] * L
            gbase = si * TWBP
            for s in range(TW):                                 # fully unrolled
                g = gbuf[pl.ds(gbase + s * BP, BP), :]          # (BP, LH)
                S_new = jnp.tanh(
                    g + jnp.dot(S, wbig, preferred_element_type=jnp.float32))
                if s < L - 1:
                    # warm-up: layers > s have not started yet; keep their initial h.
                    keep = S_new[:, :(s + 1) * H]
                    if h_init is None:
                        rest = [jnp.zeros((BP, (L - 1 - s) * H), jnp.float32)]
                    else:
                        rest = list(h_init[s + 1:])
                    S = jnp.concatenate([keep] + rest, axis=1)
                else:
                    S = S_new
                if seq_ref is not None and s >= L - 1:
                    # last-layer output at time (s - L + 1) sits in the top lane
                    # block; store the full lane-dense slab — the consumer masks
                    # the other lanes via W_o2's zero rows.
                    seq_ref[pl.ds((s - L + 1) * BP, BP), :] = S
                if need_finals:
                    l = s - (T - 1)              # layer l's final time step is here
                    if 0 <= l < L:
                        finals[l] = S[:, l * H:(l + 1) * H]
            return finals, S

        # stack 0: rnn_du  -> only the per-layer final hidden states h1 are consumed
        h1, _ = run_stack(0, None, None, True)

        # stack 1: rnn_u   -> only the last-layer output sequence o2 is consumed
        run_stack(1, h1, o2buf, False)

        # finalize stack-2 gates: add the o2 contribution of concat([x, o2]) in one
        # bulk matmul (W_o2's nonzero rows select the last-layer lanes of o2buf).
        g3 = gbuf[pl.ds(2 * TWBP, T * BP), :]
        gbuf[pl.ds(2 * TWBP, T * BP), :] = g3 + jnp.dot(
            o2buf[...], w_o2_ref[...], preferred_element_type=jnp.float32)

        # stack 2: rnn_xyzq -> only the final hidden of the last layer is consumed
        _, S3 = run_stack(2, h1, None, False)
        last = S3[:, (L - 1) * H:]                              # (BP, H)
        lastB = last[:B, :]                                     # drop pad rows

        # ------------------------------- heads ---------------------------------
        haux = haux_ref[...]                                    # (3, H)
        gamma, beta = haux[0:1, :], haux[1:2, :]
        fcb = haux[2:3, 0:6]                                    # [fc_xyz_b | fc_rz_b]
        # training-mode BatchNorm (batch mean, biased variance, eps=1e-5)
        mean = jnp.mean(lastB, axis=0, keepdims=True)
        var = jnp.mean((lastB - mean) ** 2, axis=0, keepdims=True)
        xbn = (lastB - mean) * jax.lax.rsqrt(var + 1e-5) * gamma + beta
        # fused block-diagonal head matmul: [xbn | last] @ [[W_xyz, 0], [0, W_rz]]
        z = jnp.dot(jnp.concatenate([xbn, lastB], axis=1), w_head_ref[...],
                    preferred_element_type=jnp.float32) + fcb
        p = 1.0 / (1.0 + jnp.exp(-z[:, 0:3]))                   # sigmoid(fc_xyz(bn))
        rr = jnp.tanh(z[:, 3:6])                                # tanh(fc_rz(last))
        nrm = jnp.sqrt(jnp.sum(rr * rr, axis=1, keepdims=True))
        r = rr / jnp.maximum(nrm, 1e-12)                        # F.normalize, exact
        out_ref[...] = jnp.concatenate([p, r], axis=1)          # single (B, 6) store

    return kernel


# --------------------------- parameter preparation ------------------------- #

def prepare_kernel_params(params, n_feat):
    """One-time host-side repack of PyTorch-layout weights into a handful of
    lane/sublane-dense slabs consumed by the fused kernel.

    The module slices the feature dim as du=[0:5], x=[5:11], u=[11:]; layer-0
    input weights are scattered to those offsets of the full feature width, and a
    trailing ones-column row carries every bias, so the kernel never slices or
    concatenates along the feature dimension.
    """
    H = params["hidden_size"]
    L = params["num_layers"]
    LH = L * H
    Fa = n_feat + 1
    n_du, n_x = 5, 6
    n_u = n_feat - 11

    def pack_w_in(layers, off, width, w_l0=None):
        w = jnp.zeros((Fa, LH), jnp.float32)
        w = w.at[off:off + width, 0:H].set(layers[0][0] if w_l0 is None else w_l0)
        for l, (_, _, b) in enumerate(layers):                  # bias row (ones col)
            w = w.at[n_feat, l * H:(l + 1) * H].set(b.reshape(-1))
        return w

    def pack_w_big(layers):
        w = jnp.zeros((LH, LH), jnp.float32)
        for l, (wih, whh, _) in enumerate(layers):
            w = w.at[l * H:(l + 1) * H, l * H:(l + 1) * H].set(whh)
            if l >= 1:
                w = w.at[(l - 1) * H:l * H, l * H:(l + 1) * H].set(wih)
        return w

    du, u, xq = params["rnn_du"], params["rnn_u"], params["rnn_xyzq"]
    w_in = jnp.concatenate([
        pack_w_in(du, 0, n_du),
        pack_w_in(u, 11, n_u),
        pack_w_in(xq, 5, n_x, w_l0=xq[0][0][:n_x]),
    ], axis=0)                                                  # (3*Fa, LH)
    w_big = jnp.concatenate(
        [pack_w_big(du), pack_w_big(u), pack_w_big(xq)], axis=0)  # (3*LH, LH)
    w_o2 = jnp.zeros((LH, LH), jnp.float32).at[
        (L - 1) * H:, 0:H].set(xq[0][0][n_x:])                  # o2 part of concat
    w_head = jnp.zeros((2 * H, 6), jnp.float32)
    w_head = w_head.at[0:H, 0:3].set(params["fc_xyz_w"])
    w_head = w_head.at[H:, 3:6].set(params["fc_rz_w"])
    head_aux = jnp.zeros((3, H), jnp.float32)
    head_aux = head_aux.at[0, :].set(params["bn_gamma"].reshape(-1))
    head_aux = head_aux.at[1, :].set(params["bn_beta"].reshape(-1))
    head_aux = head_aux.at[2, 0:3].set(params["fc_xyz_b"].reshape(-1))
    head_aux = head_aux.at[2, 3:6].set(params["fc_rz_b"].reshape(-1))
    return {"hidden_size": H, "num_layers": L, "w_in": w_in, "w_big": w_big,
            "w_o2": w_o2, "w_head": w_head, "head_aux": head_aux}


# ------------------------------ model wrapper ------------------------------ #

def rnn_forward_model(x_rnn, kparams):
    """x_rnn: (B, T, F) batch-first.  kparams: output of prepare_kernel_params."""
    B, T, F = x_rnn.shape
    H = kparams["hidden_size"]
    L = kparams["num_layers"]
    assert T >= L and H >= 6
    BP = ((B + 7) // 8) * 8                      # pad batch to a full sublane group
    TW = T + L - 1
    LH = L * H

    # one-time layout plumbing: batch-first -> time-major, pad batch, append a ones
    # column (carries the biases through the hoisted matmul) and L-1 zero-feature
    # time blocks (bias-only gates for the wavefront cool-down steps).
    x_tbf = jnp.transpose(x_rnn, (1, 0, 2)).astype(jnp.float32)       # (T, B, F)
    x_tbf = jnp.pad(x_tbf, ((0, L - 1), (0, BP - B), (0, 0)))         # (TW, BP, F)
    ones = jnp.ones((TW, BP, 1), jnp.float32)
    x_aug = jnp.concatenate([x_tbf, ones], axis=2).reshape(TW * BP, F + 1)

    kernel = _make_fused_kernel(T, B, BP, L, H, F)
    out = pl.pallas_call(
        kernel,
        out_shape=jax.ShapeDtypeStruct((B, 6), jnp.float32),
        in_specs=[_VMEM] * 6,
        out_specs=_VMEM,
        scratch_shapes=[pltpu.VMEM((3 * TW * BP, LH), jnp.float32),   # gates slab
                        pltpu.VMEM((T * BP, LH), jnp.float32)],       # o2 sequence
        # TODO(synk): for batch > 8 add a batch-tile grid with
        # dimension_semantics=("parallel",) so the second v7x TensorCore is used.
    )(x_aug, kparams["w_in"], kparams["w_o2"], kparams["w_big"],
      kparams["w_head"], kparams["head_aux"])
    return out[:, 0:3], out[:, 3:6]


# --------------------------- deterministic params --------------------------- #

def init_rnn_stack(key, input_size, hidden_size, num_layers):
    k = 1.0 / jnp.sqrt(jnp.float32(hidden_size))
    layers = []
    for l in range(num_layers):
        d_in = input_size if l == 0 else hidden_size
        key, k1, k2, k3, k4 = jax.random.split(key, 5)
        wih = jax.random.uniform(k1, (d_in, hidden_size), jnp.float32, -k, k)
        whh = jax.random.uniform(k2, (hidden_size, hidden_size), jnp.float32, -k, k)
        bih = jax.random.uniform(k3, (hidden_size,), jnp.float32, -k, k)
        bhh = jax.random.uniform(k4, (hidden_size,), jnp.float32, -k, k)
        layers.append((wih, whh, (bih + bhh)[None, :]))
    return key, layers


def init_params(key, input_size, hidden_size, num_layers):
    p = {"hidden_size": hidden_size, "num_layers": num_layers}
    key, p["rnn_du"] = init_rnn_stack(key, input_size[0], hidden_size, num_layers)
    key, p["rnn_u"] = init_rnn_stack(key, input_size[1], hidden_size, num_layers)
    key, p["rnn_xyzq"] = init_rnn_stack(key, input_size[2] + hidden_size,
                                        hidden_size, num_layers)
    kl = 1.0 / jnp.sqrt(jnp.float32(hidden_size))
    key, k1, k2, k3, k4 = jax.random.split(key, 5)
    p["fc_xyz_w"] = jax.random.uniform(k1, (hidden_size, 3), jnp.float32, -kl, kl)
    p["fc_xyz_b"] = jax.random.uniform(k2, (1, 3), jnp.float32, -kl, kl)
    p["fc_rz_w"] = jax.random.uniform(k3, (hidden_size, 3), jnp.float32, -kl, kl)
    p["fc_rz_b"] = jax.random.uniform(k4, (1, 3), jnp.float32, -kl, kl)
    p["bn_gamma"] = jnp.ones((1, hidden_size), jnp.float32)
    p["bn_beta"] = jnp.zeros((1, hidden_size), jnp.float32)
    return p


# ----------------------------- pure-JAX reference --------------------------- #

def _ref_rnn(x_btd, h0_lbh, layers):
    B, T, _ = x_btd.shape
    h_finals = []
    inp = x_btd
    for l, (wih, whh, b) in enumerate(layers):
        h = h0_lbh[l]
        outs = []
        for t in range(T):
            h = jnp.tanh(inp[:, t, :] @ wih + h @ whh + b)
            outs.append(h)
        inp = jnp.stack(outs, axis=1)
        h_finals.append(h)
    return inp, jnp.stack(h_finals, axis=0)


def reference_forward(x_rnn, params):
    B = x_rnn.shape[0]
    H, L = params["hidden_size"], params["num_layers"]
    du, x, u = x_rnn[:, :, :5], x_rnn[:, :, 5:11], x_rnn[:, :, 11:]
    h0 = jnp.zeros((L, B, H), jnp.float32)
    o1, h1 = _ref_rnn(du, h0, params["rnn_du"])
    o2, _ = _ref_rnn(u, h1, params["rnn_u"])
    out, _ = _ref_rnn(jnp.concatenate([x, o2], axis=2), h1, params["rnn_xyzq"])
    last = out[:, -1, :]
    mean = jnp.mean(last, axis=0, keepdims=True)
    var = jnp.mean((last - mean) ** 2, axis=0, keepdims=True)
    xbn = (last - mean) / jnp.sqrt(var + 1e-5) * params["bn_gamma"] + params["bn_beta"]
    p = jax.nn.sigmoid(xbn @ params["fc_xyz_w"] + params["fc_xyz_b"])
    r = jnp.tanh(last @ params["fc_rz_w"] + params["fc_rz_b"])
    r = r / jnp.maximum(jnp.linalg.norm(r, axis=1, keepdims=True), 1e-12)
    return p, r


# ----------------------------------- main ----------------------------------- #

if __name__ == "__main__":
    input_size = (5, 4, 6)     # du has 5 feats, u has 4 feats, x has 6 feats
    hidden_size = 32
    num_layers = 2
    B, T = 2, 8
    n_feat = 11 + input_size[1]                  # = 15

    key = jax.random.PRNGKey(0)
    kp, kx = jax.random.split(key)
    params = init_params(kp, input_size, hidden_size, num_layers)
    x_rnn = jax.random.normal(kx, (B, T, n_feat), jnp.float32)

    kparams = prepare_kernel_params(params, n_feat)   # one-time weight repack

    p, r = rnn_forward_model(x_rnn, kparams)
    p, r = jax.block_until_ready((p, r))

    p_ref, r_ref = reference_forward(x_rnn, params)
    assert p.shape == (B, 3) and r.shape == (B, 3)
    assert jnp.allclose(p, p_ref, atol=5e-3, rtol=5e-3)
    assert jnp.allclose(r, r_ref, atol=5e-3, rtol=5e-3)

    print("KERNEL_OK")
</pallas_src>

<mosaic_0001>
module attributes {stable_mosaic.version = 11 : i64} {
  func.func @kernel(%arg0: memref<72x16xf32, #tpu.memory_space<vmem>>, %arg1: memref<48x64xf32, #tpu.memory_space<vmem>>, %arg2: memref<64x64xf32, #tpu.memory_space<vmem>>, %arg3: memref<192x64xf32, #tpu.memory_space<vmem>>, %arg4: memref<64x6xf32, #tpu.memory_space<vmem>>, %arg5: memref<3x32xf32, #tpu.memory_space<vmem>>, %arg6: memref<2x6xf32, #tpu.memory_space<vmem>>, %arg7: memref<216x64xf32, #tpu.memory_space<vmem>>, %arg8: memref<64x64xf32, #tpu.memory_space<vmem>>) attributes {dimension_semantics = [], scalar_prefetch = 0 : i64, scratch_operands = 2 : i64, tpu.core_type = #tpu.core_type<tc>} {
    %c0 = arith.constant 0 : index
    %c0_0 = arith.constant 0 : index
    %0 = vector.load %arg1[%c0, %c0_0] : memref<48x64xf32, #tpu.memory_space<vmem>>, vector<16x64xf32>
    %c0_1 = arith.constant 0 : index
    %c0_2 = arith.constant 0 : index
    %1 = vector.load %arg0[%c0_1, %c0_2] : memref<72x16xf32, #tpu.memory_space<vmem>>, vector<72x16xf32>
    %cst = arith.constant dense<0.000000e+00> : vector<72x64xf32>
    %2 = tpu.matmul %1, %0, %cst {dimension_numbers = #tpu.dot_dimension_numbers<[1], [0], [0], [1], [0, 0, 1, 1], [], []>} : vector<72x16xf32>, vector<16x64xf32>, vector<72x64xf32> -> vector<72x64xf32>
    %c0_3 = arith.constant 0 : index
    %c0_4 = arith.constant 0 : index
    %3 = vector.load %arg7[%c0_3, %c0_4] : memref<216x64xf32, #tpu.memory_space<vmem>>, vector<72x64xf32>
    tpu.vector_store %arg7[%c0_3, %c0_4], %2 {strides = array<i32>} : memref<216x64xf32, #tpu.memory_space<vmem>>, vector<72x64xf32>,
    %c16 = arith.constant 16 : index
    %c0_5 = arith.constant 0 : index
    %4 = vector.load %arg1[%c16, %c0_5] : memref<48x64xf32, #tpu.memory_space<vmem>>, vector<16x64xf32>
    %c0_6 = arith.constant 0 : index
    %c0_7 = arith.constant 0 : index
    %5 = vector.load %arg0[%c0_6, %c0_7] : memref<72x16xf32, #tpu.memory_space<vmem>>, vector<72x16xf32>
    %cst_8 = arith.constant dense<0.000000e+00> : vector<72x64xf32>
    %6 = tpu.matmul %5, %4, %cst_8 {dimension_numbers = #tpu.dot_dimension_numbers<[1], [0], [0], [1], [0, 0, 1, 1], [], []>} : vector<72x16xf32>, vector<16x64xf32>, vector<72x64xf32> -> vector<72x64xf32>
    %c72 = arith.constant 72 : index
    %c0_9 = arith.constant 0 : index
    %7 = vector.load %arg7[%c72, %c0_9] : memref<216x64xf32, #tpu.memory_space<vmem>>, vector<72x64xf32>
    tpu.vector_store %arg7[%c72, %c0_9], %6 {strides = array<i32>} : memref<216x64xf32, #tpu.memory_space<vmem>>, vector<72x64xf32>,
    %c32 = arith.constant 32 : index
    %c0_10 = arith.constant 0 : index
    %8 = vector.load %arg1[%c32, %c0_10] : memref<48x64xf32, #tpu.memory_space<vmem>>, vector<16x64xf32>
    %c0_11 = arith.constant 0 : index
    %c0_12 = arith.constant 0 : index
    %9 = vector.load %arg0[%c0_11, %c0_12] : memref<72x16xf32, #tpu.memory_space<vmem>>, vector<72x16xf32>
    %cst_13 = arith.constant dense<0.000000e+00> : vector<72x64xf32>
    %10 = tpu.matmul %9, %8, %cst_13 {dimension_numbers = #tpu.dot_dimension_numbers<[1], [0], [0], [1], [0, 0, 1, 1], [], []>} : vector<72x16xf32>, vector<16x64xf32>, vector<72x64xf32> -> vector<72x64xf32>
    %c144 = arith.constant 144 : index
    %c0_14 = arith.constant 0 : index
    %11 = vector.load %arg7[%c144, %c0_14] : memref<216x64xf32, #tpu.memory_space<vmem>>, vector<72x64xf32>
    tpu.vector_store %arg7[%c144, %c0_14], %10 {strides = array<i32>} : memref<216x64xf32, #tpu.memory_space<vmem>>, vector<72x64xf32>,
    %c0_15 = arith.constant 0 : index
    %c0_16 = arith.constant 0 : index
    %12 = vector.load %arg3[%c0_15, %c0_16] : memref<192x64xf32, #tpu.memory_space<vmem>>, vector<64x64xf32>
    %cst_17 = arith.constant 0.000000e+00 : f32
    %13 = vector.broadcast %cst_17 : f32 to vector<8x64xf32>
    %c0_18 = arith.constant 0 : index
    %c0_19 = arith.constant 0 : index
    %14 = vector.load %arg7[%c0_18, %c0_19] : memref<216x64xf32, #tpu.memory_space<vmem>>, vector<8x64xf32>
    %cst_20 = arith.constant dense<0.000000e+00> : vector<8x64xf32>
    %15 = tpu.matmul %13, %12, %cst_20 {dimension_numbers = #tpu.dot_dimension_numbers<[1], [0], [0], [1], [0, 0, 1, 1], [], []>} : vector<8x64xf32>, vector<64x64xf32>, vector<8x64xf32> -> vector<8x64xf32>
    %16 = arith.addf %14, %15 : vector<8x64xf32>
    %17 = math.tanh %16 : vector<8x64xf32>
    %18 = vector.extract_strided_slice %17 {offsets = [0, 0], sizes = [8, 32], strides = [1, 1]} : vector<8x64xf32> to vector<8x32xf32>
    %cst_21 = arith.constant 0.000000e+00 : f32
    %19 = vector.broadcast %cst_21 : f32 to vector<8x32xf32>
    %20 = tpu.concatenate %18, %19 in 1 : vector<8x32xf32>, vector<8x32xf32> -> vector<8x64xf32>
    %c8 = arith.constant 8 : index
    %c0_22 = arith.constant 0 : index
    %21 = vector.load %arg7[%c8, %c0_22] : memref<216x64xf32, #tpu.memory_space<vmem>>, vector<8x64xf32>
    %cst_23 = arith.constant dense<0.000000e+00> : vector<8x64xf32>
    %22 = tpu.matmul %20, %12, %cst_23 {dimension_numbers = #tpu.dot_dimension_numbers<[1], [0], [0], [1], [0, 0, 1, 1], [], []>} : vector<8x64xf32>, vector<64x64xf32>, vector<8x64xf32> -> vector<8x64xf32>
    %23 = arith.addf %21, %22 : vector<8x64xf32>
    %24 = math.tanh %23 : vector<8x64xf32>
    %c16_24 = arith.constant 16 : index
    %c0_25 = arith.constant 0 : index
    %25 = vector.load %arg7[%c16_24, %c0_25] : memref<216x64xf32, #tpu.memory_space<vmem>>, vector<8x64xf32>
    %cst_26 = arith.constant dense<0.000000e+00> : vector<8x64xf32>
    %26 = tpu.matmul %24, %12, %cst_26 {dimension_numbers = #tpu.dot_dimension_numbers<[1], [0], [0], [1], [0, 0, 1, 1], [], []>} : vector<8x64xf32>, vector<64x64xf32>, vector<8x64xf32> -> vector<8x64xf32>
    %27 = arith.addf %25, %26 : vector<8x64xf32>
    %28 = math.tanh %27 : vector<8x64xf32>
    %c24 = arith.constant 24 : index
    %c0_27 = arith.constant 0 : index
    %29 = vector.load %arg7[%c24, %c0_27] : memref<216x64xf32, #tpu.memory_space<vmem>>, vector<8x64xf32>
    %cst_28 = arith.constant dense<0.000000e+00> : vector<8x64xf32>
    %30 = tpu.matmul %28, %12, %cst_28 {dimension_numbers = #tpu.dot_dimension_numbers<[1], [0], [0], [1], [0, 0, 1, 1], [], []>} : vector<8x64xf32>, vector<64x64xf32>, vector<8x64xf32> -> vector<8x64xf32>
    %31 = arith.addf %29, %30 : vector<8x64xf32>
    %32 = math.tanh %31 : vector<8x64xf32>
    %c32_29 = arith.constant 32 : index
    %c0_30 = arith.constant 0 : index
    %33 = vector.load %arg7[%c32_29, %c0_30] : memref<216x64xf32, #tpu.memory_space<vmem>>, vector<8x64xf32>
    %cst_31 = arith.constant dense<0.000000e+00> : vector<8x64xf32>
    %34 = tpu.matmul %32, %12, %cst_31 {dimension_numbers = #tpu.dot_dimension_numbers<[1], [0], [0], [1], [0, 0, 1, 1], [], []>} : vector<8x64xf32>, vector<64x64xf32>, vector<8x64xf32> -> vector<8x64xf32>
    %35 = arith.addf %33, %34 : vector<8x64xf32>
    %36 = math.tanh %35 : vector<8x64xf32>
    %c40 = arith.constant 40 : index
    %c0_32 = arith.constant 0 : index
    %37 = vector.load %arg7[%c40, %c0_32] : memref<216x64xf32, #tpu.memory_space<vmem>>, vector<8x64xf32>
    %cst_33 = arith.constant dense<0.000000e+00> : vector<8x64xf32>
    %38 = tpu.matmul %36, %12, %cst_33 {dimension_numbers = #tpu.dot_dimension_numbers<[1], [0], [0], [1], [0, 0, 1, 1], [], []>} : vector<8x64xf32>, vector<64x64xf32>, vector<8x64xf32> -> vector<8x64xf32>
    %39 = arith.addf %37, %38 : vector<8x64xf32>
    %40 = math.tanh %39 : vector<8x64xf32>
    %c48 = arith.constant 48 : index
    %c0_34 = arith.constant 0 : index
    %41 = vector.load %arg7[%c48, %c0_34] : memref<216x64xf32, #tpu.memory_space<vmem>>, vector<8x64xf32>
    %cst_35 = arith.constant dense<0.000000e+00> : vector<8x64xf32>
    %42 = tpu.matmul %40, %12, %cst_35 {dimension_numbers = #tpu.dot_dimension_numbers<[1], [0], [0], [1], [0, 0, 1, 1], [], []>} : vector<8x64xf32>, vector<64x64xf32>, vector<8x64xf32> -> vector<8x64xf32>
    %43 = arith.addf %41, %42 : vector<8x64xf32>
    %44 = math.tanh %43 : vector<8x64xf32>
    %c56 = arith.constant 56 : index
    %c0_36 = arith.constant 0 : index
    %45 = vector.load %arg7[%c56, %c0_36] : memref<216x64xf32, #tpu.memory_space<vmem>>, vector<8x64xf32>
    %cst_37 = arith.constant dense<0.000000e+00> : vector<8x64xf32>
    %46 = tpu.matmul %44, %12, %cst_37 {dimension_numbers = #tpu.dot_dimension_numbers<[1], [0], [0], [1], [0, 0, 1, 1], [], []>} : vector<8x64xf32>, vector<64x64xf32>, vector<8x64xf32> -> vector<8x64xf32>
    %47 = arith.addf %45, %46 : vector<8x64xf32>
    %48 = math.tanh %47 : vector<8x64xf32>
    %49 = vector.extract_strided_slice %48 {offsets = [0, 0], sizes = [8, 32], strides = [1, 1]} : vector<8x64xf32> to vector<8x32xf32>
    %c64 = arith.constant 64 : index
    %c0_38 = arith.constant 0 : index
    %50 = vector.load %arg7[%c64, %c0_38] : memref<216x64xf32, #tpu.memory_space<vmem>>, vector<8x64xf32>
    %cst_39 = arith.constant dense<0.000000e+00> : vector<8x64xf32>
    %51 = tpu.matmul %48, %12, %cst_39 {dimension_numbers = #tpu.dot_dimension_numbers<[1], [0], [0], [1], [0, 0, 1, 1], [], []>} : vector<8x64xf32>, vector<64x64xf32>, vector<8x64xf32> -> vector<8x64xf32>
    %52 = arith.addf %50, %51 : vector<8x64xf32>
    %53 = math.tanh %52 : vector<8x64xf32>
    %54 = vector.extract_strided_slice %53 {offsets = [0, 32], sizes = [8, 32], strides = [1, 1]} : vector<8x64xf32> to vector<8x32xf32>
    %c64_40 = arith.constant 64 : index
    %c0_41 = arith.constant 0 : index
    %55 = vector.load %arg3[%c64_40, %c0_41] : memref<192x64xf32, #tpu.memory_space<vmem>>, vector<64x64xf32>
    %56 = tpu.concatenate %49, %54 in 1 : vector<8x32xf32>, vector<8x32xf32> -> vector<8x64xf32>
    %c72_42 = arith.constant 72 : index
    %c0_43 = arith.constant 0 : index
    %57 = vector.load %arg7[%c72_42, %c0_43] : memref<216x64xf32, #tpu.memory_space<vmem>>, vector<8x64xf32>
    %cst_44 = arith.constant dense<0.000000e+00> : vector<8x64xf32>
    %58 = tpu.matmul %56, %55, %cst_44 {dimension_numbers = #tpu.dot_dimension_numbers<[1], [0], [0], [1], [0, 0, 1, 1], [], []>} : vector<8x64xf32>, vector<64x64xf32>, vector<8x64xf32> -> vector<8x64xf32>
    %59 = arith.addf %57, %58 : vector<8x64xf32>
    %60 = math.tanh %59 : vector<8x64xf32>
    %61 = vector.extract_strided_slice %60 {offsets = [0, 0], sizes = [8, 32], strides = [1, 1]} : vector<8x64xf32> to vector<8x32xf32>
    %62 = tpu.concatenate %61, %54 in 1 : vector<8x32xf32>, vector<8x32xf32> -> vector<8x64xf32>
    %c80 = arith.constant 80 : index
    %c0_45 = arith.constant 0 : index
    %63 = vector.load %arg7[%c80, %c0_45] : memref<216x64xf32, #tpu.memory_space<vmem>>, vector<8x64xf32>
    %cst_46 = arith.constant dense<0.000000e+00> : vector<8x64xf32>
    %64 = tpu.matmul %62, %55, %cst_46 {dimension_numbers = #tpu.dot_dimension_numbers<[1], [0], [0], [1], [0, 0, 1, 1], [], []>} : vector<8x64xf32>, vector<64x64xf32>, vector<8x64xf32> -> vector<8x64xf32>
    %65 = arith.addf %63, %64 : vector<8x64xf32>
    %66 = math.tanh %65 : vector<8x64xf32>
    %c0_47 = arith.constant 0 : index
    %c0_48 = arith.constant 0 : index
    %67 = vector.load %arg8[%c0_47, %c0_48] : memref<64x64xf32, #tpu.memory_space<vmem>>, vector<8x64xf32>
    tpu.vector_store %arg8[%c0_47, %c0_48], %66 {strides = array<i32>} : memref<64x64xf32, #tpu.memory_space<vmem>>, vector<8x64xf32>,
    %c88 = arith.constant 88 : index
    %c0_49 = arith.constant 0 : index
    %68 = vector.load %arg7[%c88, %c0_49] : memref<216x64xf32, #tpu.memory_space<vmem>>, vector<8x64xf32>
    %cst_50 = arith.constant dense<0.000000e+00> : vector<8x64xf32>
    %69 = tpu.matmul %66, %55, %cst_50 {dimension_numbers = #tpu.dot_dimension_numbers<[1], [0], [0], [1], [0, 0, 1, 1], [], []>} : vector<8x64xf32>, vector<64x64xf32>, vector<8x64xf32> -> vector<8x64xf32>
    %70 = arith.addf %68, %69 : vector<8x64xf32>
    %71 = math.tanh %70 : vector<8x64xf32>
    %c8_51 = arith.constant 8 : index
    %c0_52 = arith.constant 0 : index
    %72 = vector.load %arg8[%c8_51, %c0_52] : memref<64x64xf32, #tpu.memory_space<vmem>>, vector<8x64xf32>
    tpu.vector_store %arg8[%c8_51, %c0_52], %71 {strides = array<i32>} : memref<64x64xf32, #tpu.memory_space<vmem>>, vector<8x64xf32>,
    %c96 = arith.constant 96 : index
    %c0_53 = arith.constant 0 : index
    %73 = vector.load %arg7[%c96, %c0_53] : memref<216x64xf32, #tpu.memory_space<vmem>>, vector<8x64xf32>
    %cst_54 = arith.constant dense<0.000000e+00> : vector<8x64xf32>
    %74 = tpu.matmul %71, %55, %cst_54 {dimension_numbers = #tpu.dot_dimension_numbers<[1], [0], [0], [1], [0, 0, 1, 1], [], []>} : vector<8x64xf32>, vector<64x64xf32>, vector<8x64xf32> -> vector<8x64xf32>
    %75 = arith.addf %73, %74 : vector<8x64xf32>
    %76 = math.tanh %75 : vector<8x64xf32>
    %c16_55 = arith.constant 16 : index
    %c0_56 = arith.constant 0 : index
    %77 = vector.load %arg8[%c16_55, %c0_56] : memref<64x64xf32, #tpu.memory_space<vmem>>, vector<8x64xf32>
    tpu.vector_store %arg8[%c16_55, %c0_56], %76 {strides = array<i32>} : memref<64x64xf32, #tpu.memory_space<vmem>>, vector<8x64xf32>,
    %c104 = arith.constant 104 : index
    %c0_57 = arith.constant 0 : index
    %78 = vector.load %arg7[%c104, %c0_57] : memref<216x64xf32, #tpu.memory_space<vmem>>, vector<8x64xf32>
    %cst_58 = arith.constant dense<0.000000e+00> : vector<8x64xf32>
    %79 = tpu.matmul %76, %55, %cst_58 {dimension_numbers = #tpu.dot_dimension_numbers<[1], [0], [0], [1], [0, 0, 1, 1], [], []>} : vector<8x64xf32>, vector<64x64xf32>, vector<8x64xf32> -> vector<8x64xf32>
    %80 = arith.addf %78, %79 : vector<8x64xf32>
    %81 = math.tanh %80 : vector<8x64xf32>
    %c24_59 = arith.constant 24 : index
    %c0_60 = arith.constant 0 : index
    %82 = vector.load %arg8[%c24_59, %c0_60] : memref<64x64xf32, #tpu.memory_space<vmem>>, vector<8x64xf32>
    tpu.vector_store %arg8[%c24_59, %c0_60], %81 {strides = array<i32>} : memref<64x64xf32, #tpu.memory_space<vmem>>, vector<8x64xf32>,
    %c112 = arith.constant 112 : index
    %c0_61 = arith.constant 0 : index
    %83 = vector.load %arg7[%c112, %c0_61] : memref<216x64xf32, #tpu.memory_space<vmem>>, vector<8x64xf32>
    %cst_62 = arith.constant dense<0.000000e+00> : vector<8x64xf32>
    %84 = tpu.matmul %81, %55, %cst_62 {dimension_numbers = #tpu.dot_dimension_numbers<[1], [0], [0], [1], [0, 0, 1, 1], [], []>} : vector<8x64xf32>, vector<64x64xf32>, vector<8x64xf32> -> vector<8x64xf32>
    %85 = arith.addf %83, %84 : vector<8x64xf32>
    %86 = math.tanh %85 : vector<8x64xf32>
    %c32_63 = arith.constant 32 : index
    %c0_64 = arith.constant 0 : index
    %87 = vector.load %arg8[%c32_63, %c0_64] : memref<64x64xf32, #tpu.memory_space<vmem>>, vector<8x64xf32>
    tpu.vector_store %arg8[%c32_63, %c0_64], %86 {strides = array<i32>} : memref<64x64xf32, #tpu.memory_space<vmem>>, vector<8x64xf32>,
    %c120 = arith.constant 120 : index
    %c0_65 = arith.constant 0 : index
    %88 = vector.load %arg7[%c120, %c0_65] : memref<216x64xf32, #tpu.memory_space<vmem>>, vector<8x64xf32>
    %cst_66 = arith.constant dense<0.000000e+00> : vector<8x64xf32>
    %89 = tpu.matmul %86, %55, %cst_66 {dimension_numbers = #tpu.dot_dimension_numbers<[1], [0], [0], [1], [0, 0, 1, 1], [], []>} : vector<8x64xf32>, vector<64x64xf32>, vector<8x64xf32> -> vector<8x64xf32>
    %90 = arith.addf %88, %89 : vector<8x64xf32>
    %91 = math.tanh %90 : vector<8x64xf32>
    %c40_67 = arith.constant 40 : index
    %c0_68 = arith.constant 0 : index
    %92 = vector.load %arg8[%c40_67, %c0_68] : memref<64x64xf32, #tpu.memory_space<vmem>>, vector<8x64xf32>
    tpu.vector_store %arg8[%c40_67, %c0_68], %91 {strides = array<i32>} : memref<64x64xf32, #tpu.memory_space<vmem>>, vector<8x64xf32>,
    %c128 = arith.constant 128 : index
    %c0_69 = arith.constant 0 : index
    %93 = vector.load %arg7[%c128, %c0_69] : memref<216x64xf32, #tpu.memory_space<vmem>>, vector<8x64xf32>
    %cst_70 = arith.constant dense<0.000000e+00> : vector<8x64xf32>
    %94 = tpu.matmul %91, %55, %cst_70 {dimension_numbers = #tpu.dot_dimension_numbers<[1], [0], [0], [1], [0, 0, 1, 1], [], []>} : vector<8x64xf32>, vector<64x64xf32>, vector<8x64xf32> -> vector<8x64xf32>
    %95 = arith.addf %93, %94 : vector<8x64xf32>
    %96 = math.tanh %95 : vector<8x64xf32>
    %c48_71 = arith.constant 48 : index
    %c0_72 = arith.constant 0 : index
    %97 = vector.load %arg8[%c48_71, %c0_72] : memref<64x64xf32, #tpu.memory_space<vmem>>, vector<8x64xf32>
    tpu.vector_store %arg8[%c48_71, %c0_72], %96 {strides = array<i32>} : memref<64x64xf32, #tpu.memory_space<vmem>>, vector<8x64xf32>,
    %c136 = arith.constant 136 : index
    %c0_73 = arith.constant 0 : index
    %98 = vector.load %arg7[%c136, %c0_73] : memref<216x64xf32, #tpu.memory_space<vmem>>, vector<8x64xf32>
    %cst_74 = arith.constant dense<0.000000e+00> : vector<8x64xf32>
    %99 = tpu.matmul %96, %55, %cst_74 {dimension_numbers = #tpu.dot_dimension_numbers<[1], [0], [0], [1], [0, 0, 1, 1], [], []>} : vector<8x64xf32>, vector<64x64xf32>, vector<8x64xf32> -> vector<8x64xf32>
    %100 = arith.addf %98, %99 : vector<8x64xf32>
    %101 = math.tanh %100 : vector<8x64xf32>
    %c56_75 = arith.constant 56 : index
    %c0_76 = arith.constant 0 : index
    %102 = vector.load %arg8[%c56_75, %c0_76] : memref<64x64xf32, #tpu.memory_space<vmem>>, vector<8x64xf32>
    tpu.vector_store %arg8[%c56_75, %c0_76], %101 {strides = array<i32>} : memref<64x64xf32, #tpu.memory_space<vmem>>, vector<8x64xf32>,
    %c144_77 = arith.constant 144 : index
    %c0_78 = arith.constant 0 : index
    %103 = vector.load %arg7[%c144_77, %c0_78] : memref<216x64xf32, #tpu.memory_space<vmem>>, vector<64x64xf32>
    %c0_79 = arith.constant 0 : index
    %c0_80 = arith.constant 0 : index
    %104 = vector.load %arg8[%c0_79, %c0_80] : memref<64x64xf32, #tpu.memory_space<vmem>>, vector<64x64xf32>
    %c0_81 = arith.constant 0 : index
    %c0_82 = arith.constant 0 : index
    %105 = vector.load %arg2[%c0_81, %c0_82] : memref<64x64xf32, #tpu.memory_space<vmem>>, vector<64x64xf32>
    %cst_83 = arith.constant dense<0.000000e+00> : vector<64x64xf32>
    %106 = tpu.matmul %104, %105, %cst_83 {dimension_numbers = #tpu.dot_dimension_numbers<[1], [0], [0], [1], [0, 0, 1, 1], [], []>} : vector<64x64xf32>, vector<64x64xf32>, vector<64x64xf32> -> vector<64x64xf32>
    %107 = arith.addf %103, %106 : vector<64x64xf32>
    %c144_84 = arith.constant 144 : index
    %c0_85 = arith.constant 0 : index
    %108 = vector.load %arg7[%c144_84, %c0_85] : memref<216x64xf32, #tpu.memory_space<vmem>>, vector<64x64xf32>
    tpu.vector_store %arg7[%c144_84, %c0_85], %107 {strides = array<i32>} : memref<216x64xf32, #tpu.memory_space<vmem>>, vector<64x64xf32>,
    %c128_86 = arith.constant 128 : index
    %c0_87 = arith.constant 0 : index
    %109 = vector.load %arg3[%c128_86, %c0_87] : memref<192x64xf32, #tpu.memory_space<vmem>>, vector<64x64xf32>
    %110 = tpu.concatenate %49, %54 in 1 : vector<8x32xf32>, vector<8x32xf32> -> vector<8x64xf32>
    %c144_88 = arith.constant 144 : index
    %c0_89 = arith.constant 0 : index
    %111 = vector.load %arg7[%c144_88, %c0_89] : memref<216x64xf32, #tpu.memory_space<vmem>>, vector<8x64xf32>
    %cst_90 = arith.constant dense<0.000000e+00> : vector<8x64xf32>
    %112 = tpu.matmul %110, %109, %cst_90 {dimension_numbers = #tpu.dot_dimension_numbers<[1], [0], [0], [1], [0, 0, 1, 1], [], []>} : vector<8x64xf32>, vector<64x64xf32>, vector<8x64xf32> -> vector<8x64xf32>
    %113 = arith.addf %111, %112 : vector<8x64xf32>
    %114 = math.tanh %113 : vector<8x64xf32>
    %115 = vector.extract_strided_slice %114 {offsets = [0, 0], sizes = [8, 32], strides = [1, 1]} : vector<8x64xf32> to vector<8x32xf32>
    %116 = tpu.concatenate %115, %54 in 1 : vector<8x32xf32>, vector<8x32xf32> -> vector<8x64xf32>
    %c152 = arith.constant 152 : index
    %c0_91 = arith.constant 0 : index
    %117 = vector.load %arg7[%c152, %c0_91] : memref<216x64xf32, #tpu.memory_space<vmem>>, vector<8x64xf32>
    %cst_92 = arith.constant dense<0.000000e+00> : vector<8x64xf32>
    %118 = tpu.matmul %116, %109, %cst_92 {dimension_numbers = #tpu.dot_dimension_numbers<[1], [0], [0], [1], [0, 0, 1, 1], [], []>} : vector<8x64xf32>, vector<64x64xf32>, vector<8x64xf32> -> vector<8x64xf32>
    %119 = arith.addf %117, %118 : vector<8x64xf32>
    %120 = math.tanh %119 : vector<8x64xf32>
    %c160 = arith.constant 160 : index
    %c0_93 = arith.constant 0 : index
    %121 = vector.load %arg7[%c160, %c0_93] : memref<216x64xf32, #tpu.memory_space<vmem>>, vector<8x64xf32>
    %cst_94 = arith.constant dense<0.000000e+00> : vector<8x64xf32>
    %122 = tpu.matmul %120, %109, %cst_94 {dimension_numbers = #tpu.dot_dimension_numbers<[1], [0], [0], [1], [0, 0, 1, 1], [], []>} : vector<8x64xf32>, vector<64x64xf32>, vector<8x64xf32> -> vector<8x64xf32>
    %123 = arith.addf %121, %122 : vector<8x64xf32>
    %124 = math.tanh %123 : vector<8x64xf32>
    %c168 = arith.constant 168 : index
    %c0_95 = arith.constant 0 : index
    %125 = vector.load %arg7[%c168, %c0_95] : memref<216x64xf32, #tpu.memory_space<vmem>>, vector<8x64xf32>
    %cst_96 = arith.constant dense<0.000000e+00> : vector<8x64xf32>
    %126 = tpu.matmul %124, %109, %cst_96 {dimension_numbers = #tpu.dot_dimension_numbers<[1], [0], [0], [1], [0, 0, 1, 1], [], []>} : vector<8x64xf32>, vector<64x64xf32>, vector<8x64xf32> -> vector<8x64xf32>
    %127 = arith.addf %125, %126 : vector<8x64xf32>
    %128 = math.tanh %127 : vector<8x64xf32>
    %c176 = arith.constant 176 : index
    %c0_97 = arith.constant 0 : index
    %129 = vector.load %arg7[%c176, %c0_97] : memref<216x64xf32, #tpu.memory_space<vmem>>, vector<8x64xf32>
    %cst_98 = arith.constant dense<0.000000e+00> : vector<8x64xf32>
    %130 = tpu.matmul %128, %109, %cst_98 {dimension_numbers = #tpu.dot_dimension_numbers<[1], [0], [0], [1], [0, 0, 1, 1], [], []>} : vector<8x64xf32>, vector<64x64xf32>, vector<8x64xf32> -> vector<8x64xf32>
    %131 = arith.addf %129, %130 : vector<8x64xf32>
    %132 = math.tanh %131 : vector<8x64xf32>
    %c184 = arith.constant 184 : index
    %c0_99 = arith.constant 0 : index
    %133 = vector.load %arg7[%c184, %c0_99] : memref<216x64xf32, #tpu.memory_space<vmem>>, vector<8x64xf32>
    %cst_100 = arith.constant dense<0.000000e+00> : vector<8x64xf32>
    %134 = tpu.matmul %132, %109, %cst_100 {dimension_numbers = #tpu.dot_dimension_numbers<[1], [0], [0], [1], [0, 0, 1, 1], [], []>} : vector<8x64xf32>, vector<64x64xf32>, vector<8x64xf32> -> vector<8x64xf32>
    %135 = arith.addf %133, %134 : vector<8x64xf32>
    %136 = math.tanh %135 : vector<8x64xf32>
    %c192 = arith.constant 192 : index
    %c0_101 = arith.constant 0 : index
    %137 = vector.load %arg7[%c192, %c0_101] : memref<216x64xf32, #tpu.memory_space<vmem>>, vector<8x64xf32>
    %cst_102 = arith.constant dense<0.000000e+00> : vector<8x64xf32>
    %138 = tpu.matmul %136, %109, %cst_102 {dimension_numbers = #tpu.dot_dimension_numbers<[1], [0], [0], [1], [0, 0, 1, 1], [], []>} : vector<8x64xf32>, vector<64x64xf32>, vector<8x64xf32> -> vector<8x64xf32>
    %139 = arith.addf %137, %138 : vector<8x64xf32>
    %140 = math.tanh %139 : vector<8x64xf32>
    %c200 = arith.constant 200 : index
    %c0_103 = arith.constant 0 : index
    %141 = vector.load %arg7[%c200, %c0_103] : memref<216x64xf32, #tpu.memory_space<vmem>>, vector<8x64xf32>
    %cst_104 = arith.constant dense<0.000000e+00> : vector<8x64xf32>
    %142 = tpu.matmul %140, %109, %cst_104 {dimension_numbers = #tpu.dot_dimension_numbers<[1], [0], [0], [1], [0, 0, 1, 1], [], []>} : vector<8x64xf32>, vector<64x64xf32>, vector<8x64xf32> -> vector<8x64xf32>
    %143 = arith.addf %141, %142 : vector<8x64xf32>
    %144 = math.tanh %143 : vector<8x64xf32>
    %c208 = arith.constant 208 : index
    %c0_105 = arith.constant 0 : index
    %145 = vector.load %arg7[%c208, %c0_105] : memref<216x64xf32, #tpu.memory_space<vmem>>, vector<8x64xf32>
    %cst_106 = arith.constant dense<0.000000e+00> : vector<8x64xf32>
    %146 = tpu.matmul %144, %109, %cst_106 {dimension_numbers = #tpu.dot_dimension_numbers<[1], [0], [0], [1], [0, 0, 1, 1], [], []>} : vector<8x64xf32>, vector<64x64xf32>, vector<8x64xf32> -> vector<8x64xf32>
    %147 = arith.addf %145, %146 : vector<8x64xf32>
    %148 = math.tanh %147 : vector<8x64xf32>
    %149 = vector.extract_strided_slice %148 {offsets = [0, 32], sizes = [8, 32], strides = [1, 1]} : vector<8x64xf32> to vector<8x32xf32>
    %150 = vector.extract_strided_slice %149 {offsets = [0, 0], sizes = [2, 32], strides = [1, 1]} : vector<8x32xf32> to vector<2x32xf32>
    %c0_107 = arith.constant 0 : index
    %c0_108 = arith.constant 0 : index
    %151 = vector.load %arg5[%c0_107, %c0_108] : memref<3x32xf32, #tpu.memory_space<vmem>>, vector<3x32xf32>
    %152 = vector.extract_strided_slice %151 {offsets = [0, 0], sizes = [1, 32], strides = [1, 1]} : vector<3x32xf32> to vector<1x32xf32>
    %153 = vector.extract_strided_slice %151 {offsets = [1, 0], sizes = [1, 32], strides = [1, 1]} : vector<3x32xf32> to vector<1x32xf32>
    %154 = vector.extract_strided_slice %151 {offsets = [2, 0], sizes = [1, 6], strides = [1, 1]} : vector<3x32xf32> to vector<1x6xf32>
    %cst_109 = arith.constant dense<0.000000e+00> : vector<32xf32>
    %155 = vector.multi_reduction <add>, %150, %cst_109 [0] : vector<2x32xf32> to vector<32xf32>
    %156 = vector.shape_cast %155 : vector<32xf32> to vector<1x32xf32>
    %cst_110 = arith.constant 2.000000e+00 : f32
    %157 = vector.broadcast %cst_110 : f32 to vector<1x32xf32>
    %158 = arith.divf %156, %157 : vector<1x32xf32>
    %159 = vector.broadcast %158 : vector<1x32xf32> to vector<2x32xf32>
    %160 = arith.subf %150, %159 : vector<2x32xf32>
    %161 = arith.mulf %160, %160 : vector<2x32xf32>
    %cst_111 = arith.constant dense<0.000000e+00> : vector<32xf32>
    %162 = vector.multi_reduction <add>, %161, %cst_111 [0] : vector<2x32xf32> to vector<32xf32>
    %163 = vector.shape_cast %162 : vector<32xf32> to vector<1x32xf32>
    %cst_112 = arith.constant 2.000000e+00 : f32
    %164 = vector.broadcast %cst_112 : f32 to vector<1x32xf32>
    %165 = arith.divf %163, %164 : vector<1x32xf32>
    %166 = vector.broadcast %158 : vector<1x32xf32> to vector<2x32xf32>
    %167 = arith.subf %150, %166 : vector<2x32xf32>
    %cst_113 = arith.constant 9.99999974E-6 : f32
    %168 = vector.broadcast %cst_113 : f32 to vector<1x32xf32>
    %169 = arith.addf %165, %168 : vector<1x32xf32>
    %170 = math.rsqrt %169 : vector<1x32xf32>
    %171 = vector.broadcast %170 : vector<1x32xf32> to vector<2x32xf32>
    %172 = arith.mulf %167, %171 : vector<2x32xf32>
    %173 = vector.broadcast %152 : vector<1x32xf32> to vector<2x32xf32>
    %174 = arith.mulf %172, %173 : vector<2x32xf32>
    %175 = vector.broadcast %153 : vector<1x32xf32> to vector<2x32xf32>
    %176 = arith.addf %174, %175 : vector<2x32xf32>
    %177 = tpu.concatenate %176, %150 in 1 : vector<2x32xf32>, vector<2x32xf32> -> vector<2x64xf32>
    %c0_114 = arith.constant 0 : index
    %c0_115 = arith.constant 0 : index
    %178 = vector.load %arg4[%c0_114, %c0_115] : memref<64x6xf32, #tpu.memory_space<vmem>>, vector<64x6xf32>
    %cst_116 = arith.constant dense<0.000000e+00> : vector<2x6xf32>
    %179 = tpu.matmul %177, %178, %cst_116 {dimension_numbers = #tpu.dot_dimension_numbers<[1], [0], [0], [1], [0, 0, 1, 1], [], []>} : vector<2x64xf32>, vector<64x6xf32>, vector<2x6xf32> -> vector<2x6xf32>
    %180 = vector.broadcast %154 : vector<1x6xf32> to vector<2x6xf32>
    %181 = arith.addf %179, %180 : vector<2x6xf32>
    %182 = vector.extract_strided_slice %181 {offsets = [0, 0], sizes = [2, 3], strides = [1, 1]} : vector<2x6xf32> to vector<2x3xf32>
    %cst_117 = arith.constant 0.000000e+00 : f32
    %183 = vector.broadcast %cst_117 : f32 to vector<2x3xf32>
    %184 = arith.subf %183, %182 : vector<2x3xf32>
    %185 = math.exp %184 : vector<2x3xf32>
    %cst_118 = arith.constant 1.000000e+00 : f32
    %186 = vector.broadcast %cst_118 : f32 to vector<2x3xf32>
    %187 = arith.addf %186, %185 : vector<2x3xf32>
    %cst_119 = arith.constant 1.000000e+00 : f32
    %188 = vector.broadcast %cst_119 : f32 to vector<2x3xf32>
    %189 = arith.divf %188, %187 : vector<2x3xf32>
    %190 = vector.extract_strided_slice %181 {offsets = [0, 3], sizes = [2, 3], strides = [1, 1]} : vector<2x6xf32> to vector<2x3xf32>
    %191 = math.tanh %190 : vector<2x3xf32>
    %192 = arith.mulf %191, %191 : vector<2x3xf32>
    %cst_120 = arith.constant dense<0.000000e+00> : vector<2xf32>
    %193 = vector.multi_reduction <add>, %192, %cst_120 [1] : vector<2x3xf32> to vector<2xf32>
    %194 = vector.shape_cast %193 : vector<2xf32> to vector<2x1xf32>
    %195 = math.sqrt %194 : vector<2x1xf32>
    %cst_121 = arith.constant 9.99999996E-13 : f32
    %196 = vector.broadcast %cst_121 : f32 to vector<2x1xf32>
    %197 = arith.maximumf %195, %196 : vector<2x1xf32>
    %198 = vector.broadcast %197 : vector<2x1xf32> to vector<2x3xf32>
    %199 = arith.divf %191, %198 : vector<2x3xf32>
    %200 = tpu.concatenate %189, %199 in 1 : vector<2x3xf32>, vector<2x3xf32> -> vector<2x6xf32>
    %c0_122 = arith.constant 0 : index
    %c0_123 = arith.constant 0 : index
    %201 = vector.load %arg6[%c0_122, %c0_123] : memref<2x6xf32, #tpu.memory_space<vmem>>, vector<2x6xf32>
    tpu.vector_store %arg6[%c0_122, %c0_123], %200 {strides = array<i32>} : memref<2x6xf32, #tpu.memory_space<vmem>>, vector<2x6xf32>,
    return
  }
}

</mosaic_0001>

<bundles_post_ra>
// kernel: tpu_custom_call.1
= control target key start
LH: loop header
LB: loop body
LE: loop exit
PB: predicated region body
PF: predicated region fallthrough
CT: control target
= control target key end

     0   :  { %v4042_v1 = vmov 0.0   ;;  %vm4043_vm0 = vmmov 0   ;;  %vm35_vm1 = vcmask 130048   ;;  %s5043_s0 = inlined_call_operand.vmem [shape: f32[72,16], index: 0, kind: input, shape index: {}]   ;;  %s5044_s1 = inlined_call_operand.vmem [shape: f32[48,64], index: 1, kind: input, shape index: {}]   ;;  %s5045_s2 = inlined_call_operand.vmem [shape: f32[64,64], index: 2, kind: input, shape index: {}]   ;;  %s5046_s3 = inlined_call_operand.vmem [shape: f32[192,64], index: 3, kind: input, shape index: {}]   ;;  %s5047_s4 = inlined_call_operand.vmem [shape: f32[64,6], index: 4, kind: input, shape index: {}]   ;;  %s5048_s5 = inlined_call_operand.vmem [shape: f32[3,32], index: 5, kind: input, shape index: {}]   ;;  %s5049_s6 = inlined_call_operand.hbm [shape: f32[2,6], index: 6, kind: output, shape index: {}]  }
   0x1   :  { %v4086_v0 = vld [vmem:[%s5044_s1 + $0x18] sm:$0xff]  ;;  %3944 = vmatprep.subr.mxu1 %v4042_v1  ;;  %v4092_v2 = vld [vmem:[%s5044_s1 + $0x10] sm:$0xff]  ;;  %3329 = vmatprep.mubr.msk.f32.mxu1 %vm4043_vm0, %v4042_v1  ;;  %v4100_v3 = vld [vmem:[%s5043_s0 + $0x8] sm:$0xff] }
   0x2   :  { %3946 = vmatpush3.msra.mxu1 %v4086_v0  ;;  %3291 = vmatprep.subr.mxu0 %v4042_v1  ;;  %v4107_v4 = vld [vmem:[%s5046_s3 + $0x38] sm:$0xff]  ;;  %v25_v5 = vld [vmem:[%s5044_s1 + $0x8] sm:$0xff]  ;;  %v4121_v6 = vld [vmem:[%s5046_s3 + $0x30] sm:$0xff] }
   0x3   :  { %3945 = vmatprep.subr.mxu1 %v4042_v1  ;;  %3295 = vmatprep.mubr.msk.f32.mxu0 %vm4043_vm0, %v4042_v1  ;;  %v4129_v7 = vld [vmem:[%s5043_s0 + $0x10] sm:$0xff]  ;;  %v4135_v8 = vld [vmem:[%s5046_s3 + $0x28] sm:$0xff] }
   0x4   :  { %3947 = vmatpush3.msra.mxu1 %v4092_v2  ;;  %3292 = vmatpush3.msra.mxu0 %v25_v5 }
   0x5   :  { %3330 = vmatmul.mubr.msk.f32.vlgmr.msra.gmra.mxu1 %vm35_vm1, %v4100_v3  ;;  %3384 = vmatprep.subr.mxu1 %v4042_v1 }
   0x6   :  { %3385 = vmatpush3.msra.mxu1 %v4107_v4  ;;  %3332 = vmatprep.mubr.msk.f32.mxu1 %vm4043_vm0, %v4042_v1 }
   0x7   :  { %3386 = vmatprep.subr.mxu1 %v4042_v1 }
   0x8   :  { %11 = vsyncpa [#allocation5], 0  ;;  %3387 = vmatpush3.msra.mxu1 %v4121_v6  ;;  %3293 = vmatprep.subr.mxu0 %v4042_v1  ;;  %v24_v9 = vld [vmem:[%s5044_s1] sm:$0xff]  ;;  %v4160_v12 = vld [vmem:[%s5043_s0 + $0x18] sm:$0xff]  ;;  %vm173_vm2 = vcmask 523264   ;;  %vm581_vm3 = vcmask 261120  }
   0x9   :  { %3333 = vmatmul.mubr.msk.f32.gmra.mxu1 %vm35_vm1, %v4129_v7  ;;  %3388 = vmatprep.subr.mxu1 %v4042_v1  ;;  %v4148_v10 = vld [vmem:[%s5046_s3 + $0x20] sm:$0xff]  ;;  %v4167_v13 = vld [vmem:[%s5046_s3 + $0x18] sm:$0xff]  ;;  %v4178_v14 = vld [vmem:[%s5046_s3 + $0x10] sm:$0xff]  ;;  %vm2753_vm4 = vcmask 517376   ;;  %s4045_s28 = smov 96   ;;  %vm2896_vm5 = vcmask 17408  }
   0xa   :  { %v4153_v11 = vld [vmem:[%s5043_s0] sm:$0xff]  ;;  %3335 = vmatprep.mubr.msk.f32.mxu1 %vm4043_vm0, %v4042_v1  ;;  %3389 = vmatpush3.msra.mxu1 %v4135_v8  ;;  %v4192_v16 = vld [vmem:[%s5046_s3 + $0x8] sm:$0xff]  ;;  %v4229_v19 = vld [vmem:[%s5043_s0 + $0x30] sm:$0xff]  ;;  %s4047_s29 = smov [#allocation4]   ;;  %vm2910_vm8 = vcmask 23552   ;;  %vm2912_vm9 = vcmask 41984  }
   0xb   :  { %3390 = vmatprep.subr.mxu1 %v4042_v1  ;;  %3294 = vmatpush3.msra.mxu0 %v24_v9  ;;  %v4185_v15 = vld [vmem:[%s5043_s0 + $0x20] sm:$0xff]  ;;  %v4212_v18 = vld [vmem:[%s5043_s0 + $0x28] sm:$0xff]  ;;  %v4247_v20 = vld [vmem:[%s5043_s0 + $0x38] sm:$0xff]  ;;  %s2920_s30 = sshll.u32 %s4047_s29, 4  ;;  %s2921_s30 = int_to_ptr.vmem [resolvable:$true] %s2920_s30 }
   0xc   :  { %3391 = vmatpush3.msra.mxu1 %v4148_v10  ;;  %3296 = vmatmul.mubr.msk.f32.vlgmr.msra.gmra.mxu0 %vm35_vm1, %v4153_v11  ;;  %v4205_v17 = vld [vmem:[%s5046_s3] sm:$0xff]  ;;  %v341_v48 = vld [vmem:[%s5044_s1 + $0x28] sm:$0xff]  ;;  %s4020_s7 = scalar_lea.vmem %s2921_s30, 32  ;;  %p4025_p1 = scmp.lt.s32.totalorder %s2921_s30, %s2921_s30 }
   0xd   :  { %3336 = vmatmul.mubr.msk.f32.gmra.mxu1 %vm35_vm1, %v4160_v12  ;;  %3392 = vmatprep.subr.mxu1 %v4042_v1  ;;  %v4262_v21 = vld [vmem:[%s5043_s0 + $0x40] sm:$0xff]  ;;  %s4044_s0 = smov 32   ;;  %p4021_p0 = scmp.ne.s32.totalorder %s2921_s30, %s4020_s7 }
   0xe   :  { %3338 = vmatprep.mubr.msk.f32.mxu1 %vm4043_vm0, %v4042_v1  ;;  %3393 = vmatpush3.msra.mxu1 %v4167_v13  ;;  %v340_v49 = vld [vmem:[%s5044_s1 + $0x20] sm:$0xff]  ;;  %p4026_p2 = scmp.lt.s32.totalorder %s4020_s7, %s4020_s7 }
   0xf   :  { %3394 = vmatprep.subr.mxu1 %v4042_v1  ;;  %3298 = vmatprep.mubr.msk.f32.mxu0 %vm4043_vm0, %v4042_v1 }
  0x10   :  { %3395 = vmatpush3.msra.mxu1 %v4178_v14  ;;  %3299 = vmatmul.mubr.msk.f32.gmra.mxu0 %vm35_vm1, %v4100_v3  ;;  %p4027_p3 = por %p4026_p2, %p4025_p1 }
  0x11   :  { %3339 = vmatmul.mubr.msk.f32.gmra.mxu1 %vm35_vm1, %v4185_v15  ;;  %3396 = vmatprep.subr.mxu1 %v4042_v1 }
  0x12   :  { %3341 = vmatprep.mubr.msk.f32.mxu1 %vm4043_vm0, %v4042_v1  ;;  %3397 = vmatpush3.msra.mxu1 %v4192_v16  ;;  %p4028_p4 = pnand %p4027_p3, %p4021_p0 }
  0x13   :  { %3398 = vmatprep.subr.mxu1 %v4042_v1  ;;  %3301 = vmatprep.mubr.msk.f32.mxu0 %vm4043_vm0, %v4042_v1 }
  0x14   :  { %3399 = vmatpush3.msra.mxu1 %v4205_v17  ;;  %3302 = vmatmul.mubr.msk.f32.gmra.mxu0 %vm35_vm1, %v4129_v7 }
  0x15   :  { %3342 = vmatmul.mubr.msk.f32.gmra.mxu1 %vm35_vm1, %v4212_v18  ;;  %3403 = vmatprep.subr.mxu1 %v4042_v1 }
  0x16   :  { %3344 = vmatprep.mubr.msk.f32.mxu1 %vm4043_vm0, %v4042_v1  ;;  %3322 = vmatprep.subr.mxu0 %v4042_v1 }
  0x17   :  { %3323 = vmatpush3.msra.mxu0 %v4086_v0  ;;  %3304 = vmatprep.mubr.msk.f32.mxu0 %vm4043_vm0, %v4042_v1 }
  0x18   :  { %3305 = vmatmul.mubr.msk.f32.gmra.mxu0 %vm35_vm1, %v4160_v12  ;;  %3324 = vmatprep.subr.mxu0 %v4042_v1 }
  0x19   :  { %3345 = vmatmul.mubr.msk.f32.gmra.mxu1 %vm35_vm1, %v4229_v19  ;;  %3307 = vmatprep.mubr.msk.f32.mxu0 %vm4043_vm0, %v4042_v1 }
  0x1a   :  { %3347 = vmatprep.mubr.msk.f32.mxu1 %vm4043_vm0, %v4042_v1  ;;  %3325 = vmatpush3.msra.mxu0 %v4092_v2 }
  0x1b   :  { %3353 = vmatprep.subr.mxu0 %v4042_v1 }
  0x1c   :  { %3308 = vmatmul.mubr.msk.f32.gmra.mxu0 %vm35_vm1, %v4185_v15 }
  0x1d   :  { %3348 = vmatmul.mubr.msk.f32.gmra.mxu1 %vm35_vm1, %v4247_v20  ;;  %3310 = vmatprep.mubr.msk.f32.mxu0 %vm4043_vm0, %v4042_v1 }
  0x1e   :  { %3350 = vmatprep.mubr.msk.f32.mxu1 %vm4043_vm0, %v4042_v1 }
  0x20   :  { %3311 = vmatmul.mubr.msk.f32.gmra.mxu0 %vm35_vm1, %v4212_v18 }
  0x21   :  { %3351 = vmatmul.mubr.msk.f32.gmra.mxu1 %vm35_vm1, %v4262_v21  ;;  %3313 = vmatprep.mubr.msk.f32.mxu0 %vm4043_vm0, %v4042_v1 }
  0x22   :  { %3400 = vmatprep.mubr.msk.f32.mxu1 %vm4043_vm0, %v4042_v1 }
  0x24   :  { %3314 = vmatmul.mubr.msk.f32.gmra.mxu0 %vm35_vm1, %v4229_v19 }
  0x25   :  { %3401 = vmatmul.mubr.f32.vlgmr.msra.gmra.mxu1 %v4042_v1  ;;  %3316 = vmatprep.mubr.msk.f32.mxu0 %vm4043_vm0, %v4042_v1 }
  0x26   :  { %3404 = vmatpush3.msra.mxu1 %v4107_v4  ;;  %3419 = vmatprep.mubr.msk.f32.mxu1 %vm4043_vm0, %v4042_v1 }
  0x27   :  { %3405 = vmatprep.subr.mxu1 %v4042_v1 }
  0x28   :  { %3406 = vmatpush3.msra.mxu1 %v4121_v6  ;;  %3317 = vmatmul.mubr.msk.f32.gmra.mxu0 %vm35_vm1, %v4247_v20 }
  0x29   :  { %3407 = vmatprep.subr.mxu1 %v4042_v1  ;;  %3319 = vmatprep.mubr.msk.f32.mxu0 %vm4043_vm0, %v4042_v1 }
  0x2a   :  { %3408 = vmatpush3.msra.mxu1 %v4135_v8 }
  0x2b   :  { %3409 = vmatprep.subr.mxu1 %v4042_v1 }
  0x2c   :  { %3410 = vmatpush3.msra.mxu1 %v4148_v10  ;;  %3320 = vmatmul.mubr.msk.f32.gmra.mxu0 %vm35_vm1, %v4262_v21 }
  0x2d   :  { %3411 = vmatprep.subr.mxu1 %v4042_v1  ;;  %3326 = vmatprep.mubr.msk.f32.mxu0 %vm4043_vm0, %v4042_v1 }
  0x2e   :  { %3412 = vmatpush3.msra.mxu1 %v4167_v13 }
  0x2f   :  { %3413 = vmatprep.subr.mxu1 %v4042_v1 }
  0x30   :  { %3414 = vmatpush3.msra.mxu1 %v4178_v14  ;;  %3327 = vmatmul.mubr.msk.f32.vlgmr.msra.gmra.mxu0 %vm35_vm1, %v4153_v11 }
  0x31   :  { %3415 = vmatprep.subr.mxu1 %v4042_v1  ;;  %3357 = vmatprep.mubr.msk.f32.mxu0 %vm4043_vm0, %v4042_v1 }
  0x32   :  { %3416 = vmatpush3.msra.mxu1 %v4192_v16  ;;  %3354 = vmatpush3.msra.mxu0 %v341_v48 }
  0x33   :  { %3417 = vmatprep.subr.mxu1 %v4042_v1  ;;  %3355 = vmatprep.subr.mxu0 %v4042_v1 }
  0x34   :  { %3418 = vmatpush3.msra.mxu1 %v4205_v17  ;;  %3356 = vmatpush3.msra.mxu0 %v340_v49 }
  0x35   :  { %3422 = vmatprep.subr.mxu1 %v4042_v1  ;;  %3358 = vmatmul.mubr.msk.f32.vlgmr.msra.gmra.mxu0 %vm35_vm1, %v4153_v11 }
  0x36   :  { %3441 = vmatprep.subr.mxu0 %v4042_v1  ;;  %3360 = vmatprep.mubr.msk.f32.mxu0 %vm4043_vm0, %v4042_v1 }
  0x37   :  { %3442 = vmatpush3.msra.mxu0 %v4107_v4 }
  0x38   :  { %3443 = vmatprep.subr.mxu0 %v4042_v1 }
  0x39   :  { %3444 = vmatpush3.msra.mxu0 %v4121_v6 }
  0x3a   :  { %3361 = vmatmul.mubr.msk.f32.gmra.mxu0 %vm35_vm1, %v4100_v3  ;;  %3445 = vmatprep.subr.mxu0 %v4042_v1 }
  0x3b   :  { %3363 = vmatprep.mubr.msk.f32.mxu0 %vm4043_vm0, %v4042_v1  ;;  %3446 = vmatpush3.msra.mxu0 %v4135_v8 }
  0x3c   :  { %3447 = vmatprep.subr.mxu0 %v4042_v1 }
  0x3d   :  { %3448 = vmatpush3.msra.mxu0 %v4148_v10 }
  0x3e   :  { %3364 = vmatmul.mubr.msk.f32.gmra.mxu0 %vm35_vm1, %v4129_v7  ;;  %3449 = vmatprep.subr.mxu0 %v4042_v1 }
  0x3f   :  { %3366 = vmatprep.mubr.msk.f32.mxu0 %vm4043_vm0, %v4042_v1  ;;  %3450 = vmatpush3.msra.mxu0 %v4167_v13 }
  0x40   :  { %3451 = vmatprep.subr.mxu0 %v4042_v1 }
  0x41   :  { %3452 = vmatpush3.msra.mxu0 %v4178_v14 }
  0x42   :  { %3367 = vmatmul.mubr.msk.f32.gmra.mxu0 %vm35_vm1, %v4160_v12  ;;  %3453 = vmatprep.subr.mxu0 %v4042_v1 }
  0x43   :  { %3369 = vmatprep.mubr.msk.f32.mxu0 %vm4043_vm0, %v4042_v1  ;;  %3454 = vmatpush3.msra.mxu0 %v4192_v16 }
  0x44   :  { %3455 = vmatprep.subr.mxu0 %v4042_v1 }
  0x45   :  { %3456 = vmatpush3.msra.mxu0 %v4205_v17 }
  0x46   :  { %3370 = vmatmul.mubr.msk.f32.gmra.mxu0 %vm35_vm1, %v4185_v15  ;;  %3479 = vmatprep.subr.mxu0 %v4042_v1 }
  0x47   :  { %3372 = vmatprep.mubr.msk.f32.mxu0 %vm4043_vm0, %v4042_v1 }
  0x4a   :  { %3373 = vmatmul.mubr.msk.f32.gmra.mxu0 %vm35_vm1, %v4212_v18 }
  0x4b   :  { %3375 = vmatprep.mubr.msk.f32.mxu0 %vm4043_vm0, %v4042_v1 }
  0x4e   :  { %3376 = vmatmul.mubr.msk.f32.gmra.mxu0 %vm35_vm1, %v4229_v19 }
  0x4f   :  { %3378 = vmatprep.mubr.msk.f32.mxu0 %vm4043_vm0, %v4042_v1 }
  0x52   :  { %3379 = vmatmul.mubr.msk.f32.gmra.mxu0 %vm35_vm1, %v4247_v20 }
  0x53   :  { %3381 = vmatprep.mubr.msk.f32.mxu0 %vm4043_vm0, %v4042_v1 }
  0x56   :  { %3382 = vmatmul.mubr.msk.f32.gmra.mxu0 %vm35_vm1, %v4262_v21 }
  0x57   :  { %3457 = vmatprep.mubr.msk.f32.mxu0 %vm4043_vm0, %v4042_v1 }
  0xc5   :  { %v292_v22 = vpop.f32.mrf.mxu1 }
  0xc6   :  { %332 = vst.msk [vmem:[#allocation2 + $0x50] sm:$0xff] %vm173_vm2, %v292_v22 }
  0xc7   :  { %v3331_v23 = vpop.f32.mrf.mxu1 }
  0xc9   :  { %v297_v24 = vpop.f32.mrf.mxu1 }
  0xca   :  { %333 = vst.msk [vmem:[#allocation2 + $0x58] sm:$0xff] %vm173_vm2, %v297_v24 }
  0xcb   :  { %v3334_v25 = vpop.f32.mrf.mxu1 }
  0xcc   :  { %v129_v26 = vpop.f32.mrf.mxu0 }
  0xcd   :  { %v302_v27 = vpop.f32.mrf.mxu1  ;;  %174 = vst.msk [vmem:[#allocation2] sm:$0xff] %vm173_vm2, %v129_v26 }
  0xce   :  { %334 = vst.msk [vmem:[#allocation2 + $0x60] sm:$0xff] %vm173_vm2, %v302_v27  ;;  %v3297_v28 = vpop.f32.mrf.mxu0 }
  0xcf   :  { %v3337_v29 = vpop.f32.mrf.mxu1 }
  0xd0   :  { %v134_v30 = vpop.f32.mrf.mxu0 }
  0xd1   :  { %v307_v31 = vpop.f32.mrf.mxu1  ;;  %175 = vst.msk [vmem:[#allocation2 + $0x8] sm:$0xff] %vm173_vm2, %v134_v30 }
  0xd2   :  { %335 = vst.msk [vmem:[#allocation2 + $0x68] sm:$0xff] %vm173_vm2, %v307_v31  ;;  %v3300_v32 = vpop.f32.mrf.mxu0 }
  0xd3   :  { %v3340_v33 = vpop.f32.mrf.mxu1 }
  0xd4   :  { %v505_v42 = vld [vmem:[#allocation2] sm:$0xff]  ;;  %v139_v50 = vpop.f32.mrf.mxu0 }
  0xd5   :  { %v312_v34 = vpop.f32.mrf.mxu1  ;;  %176 = vst.msk [vmem:[#allocation2 + $0x10] sm:$0xff] %vm173_vm2, %v139_v50 }
  0xd6   :  { %336 = vst.msk [vmem:[#allocation2 + $0x70] sm:$0xff] %vm173_vm2, %v312_v34  ;;  %v3303_v51 = vpop.f32.mrf.mxu0 }
  0xd7   :  { %v3343_v35 = vpop.f32.mrf.mxu1 }
  0xd8   :  { %v583_v52 = vld [vmem:[#allocation2 + $0x8] sm:$0xff]  ;;  %v144_v57 = vpop.f32.mrf.mxu0 }
  0xd9   :  { %v317_v36 = vpop.f32.mrf.mxu1  ;;  %177 = vst.msk [vmem:[#allocation2 + $0x18] sm:$0xff] %vm173_vm2, %v144_v57  ;;  %v4524_v57 = vld [vmem:[%s5046_s3 + $0x70] sm:$0xff] }
  0xda   :  { %337 = vst.msk [vmem:[#allocation2 + $0x78] sm:$0xff] %vm173_vm2, %v317_v36  ;;  %v3306_v58 = vpop.f32.mrf.mxu0 }
  0xdb   :  { %v3346_v37 = vpop.f32.mrf.mxu1  ;;  %v4531_v58 = vld [vmem:[%s5046_s3 + $0x68] sm:$0xff] }
  0xdc   :  { %v149_v59 = vpop.f32.mrf.mxu0  ;;  %v659_v34 = vld [vmem:[#allocation2 + $0x10] sm:$0xff] }
  0xdd   :  { %v322_v38 = vpop.f32.mrf.mxu1  ;;  %178 = vst.msk [vmem:[#allocation2 + $0x20] sm:$0xff] %vm173_vm2, %v149_v59  ;;  %v4540_v59 = vld [vmem:[%s5046_s3 + $0x60] sm:$0xff] }
  0xde   :  { %338 = vst.msk [vmem:[#allocation2 + $0x80] sm:$0xff] %vm173_vm2, %v322_v38  ;;  %v3309_v60 = vpop.f32.mrf.mxu0 }
  0xdf   :  { %v3349_v39 = vpop.f32.mrf.mxu1  ;;  %v4549_v60 = vld [vmem:[%s5046_s3 + $0x58] sm:$0xff] }
  0xe0   :  { %v154_v61 = vpop.f32.mrf.mxu0  ;;  %v735_v39 = vld [vmem:[#allocation2 + $0x18] sm:$0xff] }
  0xe1   :  { %v327_v40 = vpop.f32.mrf.mxu1  ;;  %179 = vst.msk [vmem:[#allocation2 + $0x28] sm:$0xff] %vm173_vm2, %v154_v61  ;;  %v4558_v61 = vld [vmem:[%s5046_s3 + $0x50] sm:$0xff] }
  0xe2   :  { %339 = vst.msk [vmem:[#allocation2 + $0x88] sm:$0xff] %vm173_vm2, %v327_v40  ;;  %v3312_v62 = vpop.f32.mrf.mxu0 }
  0xe3   :  { %v3352_v41 = vpop.f32.mrf.mxu1  ;;  %v4567_v62 = vld [vmem:[%s5046_s3 + $0x48] sm:$0xff] }
  0xe4   :  { %v159_v63 = vpop.f32.mrf.mxu0 }
  0xe5   :  { %v575_v43 = vpop.f32.mrf.mxu1  ;;  %180 = vst.msk [vmem:[#allocation2 + $0x30] sm:$0xff] %vm173_vm2, %v159_v63  ;;  %v4576_v63 = vld [vmem:[%s5046_s3 + $0x40] sm:$0xff] }
  0xe6   :  { %v579_v44 = vadd.f32 %v575_v43, %v505_v42  ;;  %v3315_v0 = vpop.f32.mrf.mxu0 }
  0xe7   :  { %v3402_v45 = vpop.f32.mrf.mxu1 }
  0xe8   :  { %3954 = vtanh.f32 %v579_v44  ;;  %v164_v2 = vpop.f32.mrf.mxu0  ;;  %v811_v44 = vld [vmem:[#allocation2 + $0x20] sm:$0xff]  ;;  %v887_v49 = vld [vmem:[#allocation2 + $0x28] sm:$0xff] }
  0xe9   :  { %181 = vst.msk [vmem:[#allocation2 + $0x38] sm:$0xff] %vm173_vm2, %v164_v2 }
  0xea   :  { %v3318_v3 = vpop.f32.mrf.mxu0 }
  0xec   :  { %v169_v5 = vpop.f32.mrf.mxu0 }
  0xed   :  { %182 = vst.msk [vmem:[#allocation2 + $0x40] sm:$0xff] %vm173_vm2, %v169_v5 }
  0xee   :  { %v3321_v7 = vpop.f32.mrf.mxu0 }
  0xf0   :  { %v287_v9 = vpop.f32.mrf.mxu0 }
  0xf1   :  { %331 = vst.msk [vmem:[#allocation2 + $0x48] sm:$0xff] %vm173_vm2, %v287_v9 }
  0xf2   :  { %v3328_v11 = vpop.f32.mrf.mxu0 }
  0xf4   :  { %v1115_v0 = vld [vmem:[#allocation2 + $0x40] sm:$0xff] }
  0xf5   :  { %v3955_v46 = vpop.eup %3954  ;;  %v444_v12 = vpop.f32.mrf.mxu0 }
  0xf6   :  { %v582_v47 = vsel %vm581_vm3, %v3955_v46, 0.0  ;;  %488 = vst.msk [vmem:[#allocation2 + $0x90] sm:$0xff] %vm173_vm2, %v444_v12 }
  0xf7   :  { %3420 = vmatmul.mubr.msk.f32.vlgmr.msra.gmra.mxu1 %vm173_vm2, %v582_v47  ;;  %v3359_v15 = vpop.f32.mrf.mxu0 }
  0xf8   :  { %3423 = vmatpush3.msra.mxu1 %v4107_v4  ;;  %3438 = vmatprep.mubr.msk.f32.mxu1 %vm4043_vm0, %v4042_v1  ;;  %v1200_v11 = vld [vmem:[#allocation2 + $0x48] sm:$0xff] }
  0xf9   :  { %3424 = vmatprep.subr.mxu1 %v4042_v1 }
  0xfa   :  { %3425 = vmatpush3.msra.mxu1 %v4121_v6  ;;  %v449_v18 = vpop.f32.mrf.mxu0 }
  0xfb   :  { %3426 = vmatprep.subr.mxu1 %v4042_v1  ;;  %489 = vst.msk [vmem:[#allocation2 + $0x98] sm:$0xff] %vm173_vm2, %v449_v18 }
  0xfc   :  { %3427 = vmatpush3.msra.mxu1 %v4135_v8  ;;  %v3362_v19 = vpop.f32.mrf.mxu0 }
  0xfd   :  { %3428 = vmatprep.subr.mxu1 %v4042_v1 }
  0xfe   :  { %3429 = vmatpush3.msra.mxu1 %v4148_v10  ;;  %v454_v20 = vpop.f32.mrf.mxu0 }
  0xff   :  { %3430 = vmatprep.subr.mxu1 %v4042_v1  ;;  %490 = vst.msk [vmem:[#allocation2 + $0xa0] sm:$0xff] %vm173_vm2, %v454_v20 }
 0x100   :  { %3431 = vmatpush3.msra.mxu1 %v4167_v13  ;;  %v3365_v21 = vpop.f32.mrf.mxu0 }
 0x101   :  { %3432 = vmatprep.subr.mxu1 %v4042_v1  ;;  %v1277_v21 = vld [vmem:[#allocation2 + $0x50] sm:$0xff] }
 0x102   :  { %3433 = vmatpush3.msra.mxu1 %v4178_v14  ;;  %v459_v22 = vpop.f32.mrf.mxu0 }
 0x103   :  { %3434 = vmatprep.subr.mxu1 %v4042_v1  ;;  %491 = vst.msk [vmem:[#allocation2 + $0xa8] sm:$0xff] %vm173_vm2, %v459_v22 }
 0x104   :  { %3435 = vmatpush3.msra.mxu1 %v4192_v16  ;;  %v3368_v23 = vpop.f32.mrf.mxu0 }
 0x105   :  { %3436 = vmatprep.subr.mxu1 %v4042_v1 }
 0x106   :  { %3437 = vmatpush3.msra.mxu1 %v4205_v17  ;;  %v464_v24 = vpop.f32.mrf.mxu0 }
 0x107   :  { %3460 = vmatprep.subr.mxu1 %v4042_v1  ;;  %492 = vst.msk [vmem:[#allocation2 + $0xb0] sm:$0xff] %vm173_vm2, %v464_v24 }
 0x108   :  { %v3371_v25 = vpop.f32.mrf.mxu0 }
 0x10a   :  { %v469_v26 = vpop.f32.mrf.mxu0 }
 0x10b   :  { %493 = vst.msk [vmem:[#allocation2 + $0xb8] sm:$0xff] %vm173_vm2, %v469_v26  ;;  %v1354_v26 = vld [vmem:[#allocation2 + $0x58] sm:$0xff] }
 0x10c   :  { %v3374_v27 = vpop.f32.mrf.mxu0 }
 0x10e   :  { %v474_v28 = vpop.f32.mrf.mxu0 }
 0x10f   :  { %494 = vst.msk [vmem:[#allocation2 + $0xc0] sm:$0xff] %vm173_vm2, %v474_v28 }
 0x110   :  { %v3377_v29 = vpop.f32.mrf.mxu0 }
 0x112   :  { %v479_v30 = vpop.f32.mrf.mxu0 }
 0x113   :  { %495 = vst.msk [vmem:[#allocation2 + $0xc8] sm:$0xff] %vm173_vm2, %v479_v30 }
 0x114   :  { %v3380_v31 = vpop.f32.mrf.mxu0 }
 0x115   :  { %v1431_v31 = vld [vmem:[#allocation2 + $0x60] sm:$0xff] }
 0x116   :  { %v484_v32 = vpop.f32.mrf.mxu0 }
 0x117   :  { %496 = vst.msk [vmem:[#allocation2 + $0xd0] sm:$0xff] %vm173_vm2, %v484_v32 }
 0x118   :  { %v3383_v33 = vpop.f32.mrf.mxu0 }
 0x1b7   :  { %v653_v53 = vpop.f32.mrf.mxu1 }
 0x1b8   :  { %v657_v54 = vadd.f32 %v653_v53, %v583_v52 }
 0x1b9   :  { %v3421_v55 = vpop.f32.mrf.mxu1 }
 0x1ba   :  { %3956 = vtanh.f32 %v657_v54 }
 0x1c7   :  { %v3957_v56 = vpop.eup %3956 }
 0x1c8   :  { %3439 = vmatmul.mubr.msk.f32.vlgmr.msra.gmra.mxu1 %vm173_vm2, %v3957_v56 }
 0x1c9   :  { %3461 = vmatpush3.msra.mxu1 %v4107_v4  ;;  %3476 = vmatprep.mubr.msk.f32.mxu1 %vm4043_vm0, %v4042_v1 }
 0x1ca   :  { %3462 = vmatprep.subr.mxu1 %v4042_v1 }
 0x1cb   :  { %3463 = vmatpush3.msra.mxu1 %v4121_v6 }
 0x1cc   :  { %3464 = vmatprep.subr.mxu1 %v4042_v1 }
 0x1cd   :  { %3465 = vmatpush3.msra.mxu1 %v4135_v8 }
 0x1ce   :  { %3466 = vmatprep.subr.mxu1 %v4042_v1 }
 0x1cf   :  { %3467 = vmatpush3.msra.mxu1 %v4148_v10 }
 0x1d0   :  { %3468 = vmatprep.subr.mxu1 %v4042_v1 }
 0x1d1   :  { %3469 = vmatpush3.msra.mxu1 %v4167_v13 }
 0x1d2   :  { %3470 = vmatprep.subr.mxu1 %v4042_v1 }
 0x1d3   :  { %3471 = vmatpush3.msra.mxu1 %v4178_v14 }
 0x1d4   :  { %3472 = vmatprep.subr.mxu1 %v4042_v1 }
 0x1d5   :  { %3473 = vmatpush3.msra.mxu1 %v4192_v16 }
 0x1d6   :  { %3474 = vmatprep.subr.mxu1 %v4042_v1 }
 0x1d7   :  { %3475 = vmatpush3.msra.mxu1 %v4205_v17 }
 0x1d8   :  { %3498 = vmatprep.subr.mxu1 %v4042_v1 }
 0x288   :  { %v729_v35 = vpop.f32.mrf.mxu1 }
 0x289   :  { %v733_v36 = vadd.f32 %v729_v35, %v659_v34 }
 0x28a   :  { %v3440_v37 = vpop.f32.mrf.mxu1 }
 0x28b   :  { %3958 = vtanh.f32 %v733_v36  ;;  %v1508_v36 = vld [vmem:[#allocation2 + $0x68] sm:$0xff] }
 0x298   :  { %v3959_v38 = vpop.eup %3958 }
 0x299   :  { %3458 = vmatmul.mubr.msk.f32.vlgmr.msra.gmra.mxu0 %vm173_vm2, %v3959_v38 }
 0x29a   :  { %3480 = vmatpush3.msra.mxu0 %v4107_v4  ;;  %3495 = vmatprep.mubr.msk.f32.mxu0 %vm4043_vm0, %v4042_v1 }
 0x29b   :  { %3481 = vmatprep.subr.mxu0 %v4042_v1 }
 0x29c   :  { %3482 = vmatpush3.msra.mxu0 %v4121_v6 }
 0x29d   :  { %3483 = vmatprep.subr.mxu0 %v4042_v1 }
 0x29e   :  { %3484 = vmatpush3.msra.mxu0 %v4135_v8 }
 0x29f   :  { %3485 = vmatprep.subr.mxu0 %v4042_v1 }
 0x2a0   :  { %3486 = vmatpush3.msra.mxu0 %v4148_v10 }
 0x2a1   :  { %3487 = vmatprep.subr.mxu0 %v4042_v1 }
 0x2a2   :  { %3488 = vmatpush3.msra.mxu0 %v4167_v13 }
 0x2a3   :  { %3489 = vmatprep.subr.mxu0 %v4042_v1 }
 0x2a4   :  { %3490 = vmatpush3.msra.mxu0 %v4178_v14 }
 0x2a5   :  { %3491 = vmatprep.subr.mxu0 %v4042_v1 }
 0x2a6   :  { %3492 = vmatpush3.msra.mxu0 %v4192_v16 }
 0x2a7   :  { %3493 = vmatprep.subr.mxu0 %v4042_v1 }
 0x2a8   :  { %3494 = vmatpush3.msra.mxu0 %v4205_v17 }
 0x2a9   :  { %3517 = vmatprep.subr.mxu0 %v4042_v1 }
 0x359   :  { %v805_v40 = vpop.f32.mrf.mxu0 }
 0x35a   :  { %v809_v41 = vadd.f32 %v805_v40, %v735_v39 }
 0x35b   :  { %v3459_v42 = vpop.f32.mrf.mxu0 }
 0x35c   :  { %3960 = vtanh.f32 %v809_v41  ;;  %v1585_v41 = vld [vmem:[#allocation2 + $0x70] sm:$0xff] }
 0x369   :  { %v3961_v43 = vpop.eup %3960 }
 0x36a   :  { %3477 = vmatmul.mubr.msk.f32.vlgmr.msra.gmra.mxu1 %vm173_vm2, %v3961_v43 }
 0x36b   :  { %3499 = vmatpush3.msra.mxu1 %v4107_v4  ;;  %3514 = vmatprep.mubr.msk.f32.mxu1 %vm4043_vm0, %v4042_v1 }
 0x36c   :  { %3500 = vmatprep.subr.mxu1 %v4042_v1 }
 0x36d   :  { %3501 = vmatpush3.msra.mxu1 %v4121_v6 }
 0x36e   :  { %3502 = vmatprep.subr.mxu1 %v4042_v1 }
 0x36f   :  { %3503 = vmatpush3.msra.mxu1 %v4135_v8 }
 0x370   :  { %3504 = vmatprep.subr.mxu1 %v4042_v1 }
 0x371   :  { %3505 = vmatpush3.msra.mxu1 %v4148_v10 }
 0x372   :  { %3506 = vmatprep.subr.mxu1 %v4042_v1 }
 0x373   :  { %3507 = vmatpush3.msra.mxu1 %v4167_v13 }
 0x374   :  { %3508 = vmatprep.subr.mxu1 %v4042_v1 }
 0x375   :  { %3509 = vmatpush3.msra.mxu1 %v4178_v14 }
 0x376   :  { %3510 = vmatprep.subr.mxu1 %v4042_v1 }
 0x377   :  { %3511 = vmatpush3.msra.mxu1 %v4192_v16 }
 0x378   :  { %3512 = vmatprep.subr.mxu1 %v4042_v1 }
 0x379   :  { %3513 = vmatpush3.msra.mxu1 %v4205_v17 }
 0x37a   :  { %3536 = vmatprep.subr.mxu1 %v4042_v1 }
 0x42a   :  { %v881_v45 = vpop.f32.mrf.mxu1 }
 0x42b   :  { %v885_v46 = vadd.f32 %v881_v45, %v811_v44 }
 0x42c   :  { %v3478_v47 = vpop.f32.mrf.mxu1 }
 0x42d   :  { %3962 = vtanh.f32 %v885_v46  ;;  %v1916_v46 = vld [vmem:[%s5045_s2 + $0x38] sm:$0xff] }
 0x42e   :  { %v1662_v47 = vld [vmem:[#allocation2 + $0x78] sm:$0xff] }
 0x43a   :  { %v3963_v48 = vpop.eup %3962 }
 0x43b   :  { %3496 = vmatmul.mubr.msk.f32.vlgmr.msra.gmra.mxu0 %vm173_vm2, %v3963_v48 }
 0x43c   :  { %3518 = vmatpush3.msra.mxu0 %v4107_v4  ;;  %3533 = vmatprep.mubr.msk.f32.mxu0 %vm4043_vm0, %v4042_v1 }
 0x43d   :  { %3519 = vmatprep.subr.mxu0 %v4042_v1 }
 0x43e   :  { %3520 = vmatpush3.msra.mxu0 %v4121_v6 }
 0x43f   :  { %3521 = vmatprep.subr.mxu0 %v4042_v1 }
 0x440   :  { %3522 = vmatpush3.msra.mxu0 %v4135_v8 }
 0x441   :  { %3523 = vmatprep.subr.mxu0 %v4042_v1 }
 0x442   :  { %3524 = vmatpush3.msra.mxu0 %v4148_v10 }
 0x443   :  { %3525 = vmatprep.subr.mxu0 %v4042_v1 }
 0x444   :  { %3526 = vmatpush3.msra.mxu0 %v4167_v13 }
 0x445   :  { %3527 = vmatprep.subr.mxu0 %v4042_v1 }
 0x446   :  { %3528 = vmatpush3.msra.mxu0 %v4178_v14 }
 0x447   :  { %3529 = vmatprep.subr.mxu0 %v4042_v1 }
 0x448   :  { %3530 = vmatpush3.msra.mxu0 %v4192_v16 }
 0x449   :  { %3531 = vmatprep.subr.mxu0 %v4042_v1 }
 0x44a   :  { %3532 = vmatpush3.msra.mxu0 %v4205_v17 }
 0x44b   :  { %3555 = vmatprep.subr.mxu0 %v4042_v1 }
 0x4fb   :  { %v957_v50 = vpop.f32.mrf.mxu0 }
 0x4fc   :  { %v961_v51 = vadd.f32 %v957_v50, %v887_v49 }
 0x4fd   :  { %v3497_v52 = vpop.f32.mrf.mxu0 }
 0x4fe   :  { %3964 = vtanh.f32 %v961_v51  ;;  %v1915_v52 = vld [vmem:[%s5045_s2 + $0x30] sm:$0xff] }
 0x50b   :  { %v3965_v53 = vpop.eup %3964 }
 0x50c   :  { %3515 = vmatmul.mubr.msk.f32.vlgmr.msra.gmra.mxu1 %vm173_vm2, %v3965_v53 }
 0x50d   :  { %3537 = vmatpush3.msra.mxu1 %v4107_v4  ;;  %3552 = vmatprep.mubr.msk.f32.mxu1 %vm4043_vm0, %v4042_v1  ;;  %v963_v4 = vld [vmem:[#allocation2 + $0x30] sm:$0xff] }
 0x50e   :  { %3538 = vmatprep.subr.mxu1 %v4042_v1 }
 0x50f   :  { %3539 = vmatpush3.msra.mxu1 %v4121_v6 }
 0x510   :  { %3540 = vmatprep.subr.mxu1 %v4042_v1 }
 0x511   :  { %3541 = vmatpush3.msra.mxu1 %v4135_v8 }
 0x512   :  { %3542 = vmatprep.subr.mxu1 %v4042_v1 }
 0x513   :  { %3543 = vmatpush3.msra.mxu1 %v4148_v10 }
 0x514   :  { %3544 = vmatprep.subr.mxu1 %v4042_v1 }
 0x515   :  { %3545 = vmatpush3.msra.mxu1 %v4167_v13 }
 0x516   :  { %3546 = vmatprep.subr.mxu1 %v4042_v1 }
 0x517   :  { %3547 = vmatpush3.msra.mxu1 %v4178_v14  ;;  %v1039_v14 = vld [vmem:[#allocation2 + $0x38] sm:$0xff] }
 0x518   :  { %3548 = vmatprep.subr.mxu1 %v4042_v1 }
 0x519   :  { %3549 = vmatpush3.msra.mxu1 %v4192_v16 }
 0x51a   :  { %3550 = vmatprep.subr.mxu1 %v4042_v1 }
 0x51b   :  { %3551 = vmatpush3.msra.mxu1 %v4205_v17  ;;  %v4518_v17 = vld [vmem:[%s5046_s3 + $0x78] sm:$0xff] }
 0x51c   :  { %3574 = vmatprep.subr.mxu1 %v4042_v1 }
 0x5cc   :  { %v1033_v6 = vpop.f32.mrf.mxu1 }
 0x5cd   :  { %v1037_v8 = vadd.f32 %v1033_v6, %v963_v4  ;;  %v1914_v4 = vld [vmem:[%s5045_s2 + $0x28] sm:$0xff]  ;;  %v1913_v6 = vld [vmem:[%s5045_s2 + $0x20] sm:$0xff] }
 0x5ce   :  { %v3516_v10 = vpop.f32.mrf.mxu1 }
 0x5cf   :  { %3966 = vtanh.f32 %v1037_v8  ;;  %v1912_v8 = vld [vmem:[%s5045_s2 + $0x18] sm:$0xff]  ;;  %v1911_v10 = vld [vmem:[%s5045_s2 + $0x10] sm:$0xff] }
 0x5dc   :  { %v3967_v13 = vpop.eup %3966 }
 0x5dd   :  { %3534 = vmatmul.mubr.msk.f32.vlgmr.msra.gmra.mxu0 %vm173_vm2, %v3967_v13  ;;  %v1910_v13 = vld [vmem:[%s5045_s2 + $0x8] sm:$0xff] }
 0x5de   :  { %3571 = vmatprep.mubr.msk.f32.mxu0 %vm4043_vm0, %v4042_v1  ;;  %3556 = vmatpush3.msra.mxu0 %v4518_v17 }
 0x5df   :  { %3557 = vmatprep.subr.mxu0 %v4042_v1 }
 0x5e0   :  { %3558 = vmatpush3.msra.mxu0 %v4524_v57 }
 0x5e1   :  { %3559 = vmatprep.subr.mxu0 %v4042_v1 }
 0x5e2   :  { %3560 = vmatpush3.msra.mxu0 %v4531_v58 }
 0x5e3   :  { %3561 = vmatprep.subr.mxu0 %v4042_v1 }
 0x5e4   :  { %3562 = vmatpush3.msra.mxu0 %v4540_v59 }
 0x5e5   :  { %3563 = vmatprep.subr.mxu0 %v4042_v1 }
 0x5e6   :  { %3564 = vmatpush3.msra.mxu0 %v4549_v60 }
 0x5e7   :  { %3565 = vmatprep.subr.mxu0 %v4042_v1 }
 0x5e8   :  { %3566 = vmatpush3.msra.mxu0 %v4558_v61 }
 0x5e9   :  { %3567 = vmatprep.subr.mxu0 %v4042_v1 }
 0x5ea   :  { %3568 = vmatpush3.msra.mxu0 %v4567_v62 }
 0x5eb   :  { %3569 = vmatprep.subr.mxu0 %v4042_v1 }
 0x5ec   :  { %3570 = vmatpush3.msra.mxu0 %v4576_v63 }
 0x5ed   :  { %3593 = vmatprep.subr.mxu0 %v4042_v1 }
 0x69d   :  { %v1109_v54 = vpop.f32.mrf.mxu0 }
 0x69e   :  { %v1113_v16 = vadd.f32 %v1109_v54, %v1039_v14  ;;  %v1909_v14 = vld [vmem:[%s5045_s2] sm:$0xff] }
 0x69f   :  { %v3535_v55 = vpop.f32.mrf.mxu0 }
 0x6a0   :  { %3968 = vtanh.f32 %v1113_v16 }
 0x6ad   :  { %v3969_v56 = vpop.eup %3968 }
 0x6ae   :  { %3553 = vmatmul.mubr.msk.f32.vlgmr.msra.gmra.mxu1 %vm173_vm2, %v3969_v56 }
 0x6af   :  { %3590 = vmatprep.mubr.msk.f32.mxu1 %vm4043_vm0, %v4042_v1  ;;  %3575 = vmatpush3.msra.mxu1 %v4518_v17 }
 0x6b0   :  { %3576 = vmatprep.subr.mxu1 %v4042_v1 }
 0x6b1   :  { %3577 = vmatpush3.msra.mxu1 %v4524_v57 }
 0x6b2   :  { %3578 = vmatprep.subr.mxu1 %v4042_v1 }
 0x6b3   :  { %3579 = vmatpush3.msra.mxu1 %v4531_v58 }
 0x6b4   :  { %3580 = vmatprep.subr.mxu1 %v4042_v1 }
 0x6b5   :  { %3581 = vmatpush3.msra.mxu1 %v4540_v59 }
 0x6b6   :  { %3582 = vmatprep.subr.mxu1 %v4042_v1 }
 0x6b7   :  { %3583 = vmatpush3.msra.mxu1 %v4549_v60 }
 0x6b8   :  { %3584 = vmatprep.subr.mxu1 %v4042_v1 }
 0x6b9   :  { %3585 = vmatpush3.msra.mxu1 %v4558_v61 }
 0x6ba   :  { %3586 = vmatprep.subr.mxu1 %v4042_v1 }
 0x6bb   :  { %3587 = vmatpush3.msra.mxu1 %v4567_v62 }
 0x6bc   :  { %3588 = vmatprep.subr.mxu1 %v4042_v1 }
 0x6bd   :  { %3589 = vmatpush3.msra.mxu1 %v4576_v63 }
 0x6be   :  { %3612 = vmatprep.subr.mxu1 %v4042_v1 }
 0x76e   :  { %v1185_v2 = vpop.f32.mrf.mxu1 }
 0x76f   :  { %v1189_v3 = vadd.f32 %v1185_v2, %v1115_v0  ;;  %v4817_v0 = vld [vmem:[%s5046_s3 + $0x80] sm:$0xff] }
 0x770   :  { %v3554_v5 = vpop.f32.mrf.mxu1  ;;  %v1739_v2 = vld [vmem:[#allocation2 + $0x80] sm:$0xff] }
 0x771   :  { %3970 = vtanh.f32 %v1189_v3 }
 0x77e   :  { %v4587_v7 = vpop.eup %3970 }
 0x77f   :  { %v4591_v9 = vsel %vm581_vm3, %v3969_v56, %v4587_v7 }
 0x780   :  { %3572 = vmatmul.mubr.msk.f32.vlgmr.msra.gmra.mxu0 %vm173_vm2, %v4591_v9 }
 0x781   :  { %3594 = vmatpush3.msra.mxu0 %v4518_v17  ;;  %3609 = vmatprep.mubr.msk.f32.mxu0 %vm4043_vm0, %v4042_v1 }
 0x782   :  { %3595 = vmatprep.subr.mxu0 %v4042_v1 }
 0x783   :  { %3596 = vmatpush3.msra.mxu0 %v4524_v57 }
 0x784   :  { %3597 = vmatprep.subr.mxu0 %v4042_v1 }
 0x785   :  { %3598 = vmatpush3.msra.mxu0 %v4531_v58 }
 0x786   :  { %3599 = vmatprep.subr.mxu0 %v4042_v1 }
 0x787   :  { %3600 = vmatpush3.msra.mxu0 %v4540_v59 }
 0x788   :  { %3601 = vmatprep.subr.mxu0 %v4042_v1 }
 0x789   :  { %3602 = vmatpush3.msra.mxu0 %v4549_v60 }
 0x78a   :  { %3603 = vmatprep.subr.mxu0 %v4042_v1 }
 0x78b   :  { %3604 = vmatpush3.msra.mxu0 %v4558_v61 }
 0x78c   :  { %3605 = vmatprep.subr.mxu0 %v4042_v1 }
 0x78d   :  { %3606 = vmatpush3.msra.mxu0 %v4567_v62 }
 0x78e   :  { %3607 = vmatprep.subr.mxu0 %v4042_v1 }
 0x78f   :  { %3608 = vmatpush3.msra.mxu0 %v4576_v63 }
 0x790   :  { %3631 = vmatprep.subr.mxu0 %v4042_v1 }
 0x840   :  { %v1270_v12 = vpop.f32.mrf.mxu0 }
 0x841   :  { %v1274_v15 = vadd.f32 %v1270_v12, %v1200_v11 }
 0x842   :  { %v3573_v18 = vpop.f32.mrf.mxu0 }
 0x843   :  { %3972 = vtanh.f32 %v1274_v15  ;;  %v1894_v15 = vld [vmem:[#allocation2 + $0x98] sm:$0xff] }
 0x850   :  { %v3973_v19 = vpop.eup %3972 }
 0x851   :  { %v1276_v20 = vsel %vm581_vm3, %v3973_v19, %v4587_v7 }
 0x852   :  { %3591 = vmatmul.mubr.msk.f32.vlgmr.msra.gmra.mxu1 %vm173_vm2, %v1276_v20  ;;  %v1893_v20 = vld [vmem:[#allocation2 + $0x90] sm:$0xff] }
 0x853   :  { %3613 = vmatpush3.msra.mxu1 %v4518_v17  ;;  %3628 = vmatprep.mubr.msk.f32.mxu1 %vm4043_vm0, %v4042_v1 }
 0x854   :  { %3614 = vmatprep.subr.mxu1 %v4042_v1 }
 0x855   :  { %3615 = vmatpush3.msra.mxu1 %v4524_v57 }
 0x856   :  { %3616 = vmatprep.subr.mxu1 %v4042_v1 }
 0x857   :  { %3617 = vmatpush3.msra.mxu1 %v4531_v58 }
 0x858   :  { %3618 = vmatprep.subr.mxu1 %v4042_v1 }
 0x859   :  { %3619 = vmatpush3.msra.mxu1 %v4540_v59 }
 0x85a   :  { %3620 = vmatprep.subr.mxu1 %v4042_v1 }
 0x85b   :  { %3621 = vmatpush3.msra.mxu1 %v4549_v60 }
 0x85c   :  { %3622 = vmatprep.subr.mxu1 %v4042_v1 }
 0x85d   :  { %3623 = vmatpush3.msra.mxu1 %v4558_v61 }
 0x85e   :  { %3624 = vmatprep.subr.mxu1 %v4042_v1 }
 0x85f   :  { %3625 = vmatpush3.msra.mxu1 %v4567_v62 }
 0x860   :  { %3626 = vmatprep.subr.mxu1 %v4042_v1 }
 0x861   :  { %3627 = vmatpush3.msra.mxu1 %v4576_v63 }
 0x862   :  { %3650 = vmatprep.subr.mxu1 %v4042_v1 }
 0x912   :  { %v1347_v22 = vpop.f32.mrf.mxu1 }
 0x913   :  { %v1351_v23 = vadd.f32 %v1347_v22, %v1277_v21 }
 0x914   :  { %v3592_v24 = vpop.f32.mrf.mxu1 }
 0x915   :  { %3974 = vtanh.f32 %v1351_v23  ;;  %v1896_v23 = vld [vmem:[#allocation2 + $0xa8] sm:$0xff] }
 0x922   :  { %v3975_v25 = vpop.eup %3974 }
 0x923   :  { %1353 = vst.msk [vmem:[#allocation3] sm:$0xff] %vm173_vm2, %v3975_v25  ;;  %3610 = vmatmul.mubr.msk.f32.vlgmr.msra.gmra.mxu0 %vm173_vm2, %v3975_v25 }
 0x924   :  { %3632 = vmatpush3.msra.mxu0 %v4518_v17  ;;  %3647 = vmatprep.mubr.msk.f32.mxu0 %vm4043_vm0, %v4042_v1 }
 0x925   :  { %3633 = vmatprep.subr.mxu0 %v4042_v1 }
 0x926   :  { %3634 = vmatpush3.msra.mxu0 %v4524_v57 }
 0x927   :  { %3635 = vmatprep.subr.mxu0 %v4042_v1 }
 0x928   :  { %3636 = vmatpush3.msra.mxu0 %v4531_v58 }
 0x929   :  { %3637 = vmatprep.subr.mxu0 %v4042_v1 }
 0x92a   :  { %3638 = vmatpush3.msra.mxu0 %v4540_v59  ;;  %v1901_v53 = vld [vmem:[#allocation3] sm:$0xff] }
 0x92b   :  { %3639 = vmatprep.subr.mxu0 %v4042_v1 }
 0x92c   :  { %3640 = vmatpush3.msra.mxu0 %v4549_v60 }
 0x92d   :  { %3641 = vmatprep.subr.mxu0 %v4042_v1 }
 0x92e   :  { %3642 = vmatpush3.msra.mxu0 %v4558_v61 }
 0x92f   :  { %3643 = vmatprep.subr.mxu0 %v4042_v1 }
 0x930   :  { %3644 = vmatpush3.msra.mxu0 %v4567_v62 }
 0x931   :  { %3645 = vmatprep.subr.mxu0 %v4042_v1 }
 0x932   :  { %3646 = vmatpush3.msra.mxu0 %v4576_v63 }
 0x933   :  { %3669 = vmatprep.subr.mxu0 %v4042_v1 }
 0x9e3   :  { %v1424_v27 = vpop.f32.mrf.mxu0 }
 0x9e4   :  { %v1428_v28 = vadd.f32 %v1424_v27, %v1354_v26  ;;  %v1895_v26 = vld [vmem:[#allocation2 + $0xa0] sm:$0xff] }
 0x9e5   :  { %v3611_v29 = vpop.f32.mrf.mxu0 }
 0x9e6   :  { %3976 = vtanh.f32 %v1428_v28  ;;  %v1898_v29 = vld [vmem:[#allocation2 + $0xb8] sm:$0xff] }
 0x9f3   :  { %v3977_v30 = vpop.eup %3976 }
 0x9f4   :  { %1430 = vst.msk [vmem:[#allocation3 + $0x8] sm:$0xff] %vm173_vm2, %v3977_v30  ;;  %3629 = vmatmul.mubr.msk.f32.vlgmr.msra.gmra.mxu1 %vm173_vm2, %v3977_v30 }
 0x9f5   :  { %3651 = vmatpush3.msra.mxu1 %v4518_v17  ;;  %3666 = vmatprep.mubr.msk.f32.mxu1 %vm4043_vm0, %v4042_v1 }
 0x9f6   :  { %3652 = vmatprep.subr.mxu1 %v4042_v1 }
 0x9f7   :  { %3653 = vmatpush3.msra.mxu1 %v4524_v57 }
 0x9f8   :  { %3654 = vmatprep.subr.mxu1 %v4042_v1 }
 0x9f9   :  { %3655 = vmatpush3.msra.mxu1 %v4531_v58 }
 0x9fa   :  { %3656 = vmatprep.subr.mxu1 %v4042_v1 }
 0x9fb   :  { %3657 = vmatpush3.msra.mxu1 %v4540_v59  ;;  %v1902_v54 = vld [vmem:[#allocation3 + $0x8] sm:$0xff] }
 0x9fc   :  { %3658 = vmatprep.subr.mxu1 %v4042_v1 }
 0x9fd   :  { %3659 = vmatpush3.msra.mxu1 %v4549_v60 }
 0x9fe   :  { %3660 = vmatprep.subr.mxu1 %v4042_v1 }
 0x9ff   :  { %3661 = vmatpush3.msra.mxu1 %v4558_v61 }
 0xa00   :  { %3662 = vmatprep.subr.mxu1 %v4042_v1 }
 0xa01   :  { %3663 = vmatpush3.msra.mxu1 %v4567_v62 }
 0xa02   :  { %3664 = vmatprep.subr.mxu1 %v4042_v1 }
 0xa03   :  { %3665 = vmatpush3.msra.mxu1 %v4576_v63 }
 0xa04   :  { %3688 = vmatprep.subr.mxu1 %v4042_v1 }
 0xab4   :  { %v1501_v32 = vpop.f32.mrf.mxu1 }
 0xab5   :  { %v1505_v33 = vadd.f32 %v1501_v32, %v1431_v31 }
 0xab6   :  { %v3630_v34 = vpop.f32.mrf.mxu1 }
 0xab7   :  { %3978 = vtanh.f32 %v1505_v33  ;;  %v1897_v33 = vld [vmem:[#allocation2 + $0xb0] sm:$0xff] }
 0xac4   :  { %v3979_v35 = vpop.eup %3978 }
 0xac5   :  { %1507 = vst.msk [vmem:[#allocation3 + $0x10] sm:$0xff] %vm173_vm2, %v3979_v35  ;;  %3648 = vmatmul.mubr.msk.f32.vlgmr.msra.gmra.mxu0 %vm173_vm2, %v3979_v35 }
 0xac6   :  { %3670 = vmatpush3.msra.mxu0 %v4518_v17  ;;  %3685 = vmatprep.mubr.msk.f32.mxu0 %vm4043_vm0, %v4042_v1 }
 0xac7   :  { %3671 = vmatprep.subr.mxu0 %v4042_v1 }
 0xac8   :  { %3672 = vmatpush3.msra.mxu0 %v4524_v57 }
 0xac9   :  { %3673 = vmatprep.subr.mxu0 %v4042_v1 }
 0xaca   :  { %3674 = vmatpush3.msra.mxu0 %v4531_v58 }
 0xacb   :  { %3675 = vmatprep.subr.mxu0 %v4042_v1 }
 0xacc   :  { %3676 = vmatpush3.msra.mxu0 %v4540_v59  ;;  %v1903_v16 = vld [vmem:[#allocation3 + $0x10] sm:$0xff] }
 0xacd   :  { %3677 = vmatprep.subr.mxu0 %v4042_v1 }
 0xace   :  { %3678 = vmatpush3.msra.mxu0 %v4549_v60 }
 0xacf   :  { %3679 = vmatprep.subr.mxu0 %v4042_v1 }
 0xad0   :  { %3680 = vmatpush3.msra.mxu0 %v4558_v61 }
 0xad1   :  { %3681 = vmatprep.subr.mxu0 %v4042_v1 }
 0xad2   :  { %3682 = vmatpush3.msra.mxu0 %v4567_v62 }
 0xad3   :  { %3683 = vmatprep.subr.mxu0 %v4042_v1 }
 0xad4   :  { %3684 = vmatpush3.msra.mxu0 %v4576_v63 }
 0xad5   :  { %3707 = vmatprep.subr.mxu0 %v4042_v1 }
 0xb85   :  { %v1578_v37 = vpop.f32.mrf.mxu0 }
 0xb86   :  { %v1582_v38 = vadd.f32 %v1578_v37, %v1508_v36 }
 0xb87   :  { %v3649_v39 = vpop.f32.mrf.mxu0 }
 0xb88   :  { %3980 = vtanh.f32 %v1582_v38 }
 0xb95   :  { %v3981_v40 = vpop.eup %3980 }
 0xb96   :  { %1584 = vst.msk [vmem:[#allocation3 + $0x18] sm:$0xff] %vm173_vm2, %v3981_v40  ;;  %3667 = vmatmul.mubr.msk.f32.vlgmr.msra.gmra.mxu1 %vm173_vm2, %v3981_v40 }
 0xb97   :  { %3689 = vmatpush3.msra.mxu1 %v4518_v17  ;;  %3704 = vmatprep.mubr.msk.f32.mxu1 %vm4043_vm0, %v4042_v1 }
 0xb98   :  { %3690 = vmatprep.subr.mxu1 %v4042_v1 }
 0xb99   :  { %3691 = vmatpush3.msra.mxu1 %v4524_v57 }
 0xb9a   :  { %3692 = vmatprep.subr.mxu1 %v4042_v1 }
 0xb9b   :  { %3693 = vmatpush3.msra.mxu1 %v4531_v58 }
 0xb9c   :  { %3694 = vmatprep.subr.mxu1 %v4042_v1 }
 0xb9d   :  { %3695 = vmatpush3.msra.mxu1 %v4540_v59  ;;  %v1904_v55 = vld [vmem:[#allocation3 + $0x18] sm:$0xff] }
 0xb9e   :  { %3696 = vmatprep.subr.mxu1 %v4042_v1 }
 0xb9f   :  { %3697 = vmatpush3.msra.mxu1 %v4549_v60 }
 0xba0   :  { %3698 = vmatprep.subr.mxu1 %v4042_v1 }
 0xba1   :  { %3699 = vmatpush3.msra.mxu1 %v4558_v61 }
 0xba2   :  { %3700 = vmatprep.subr.mxu1 %v4042_v1 }
 0xba3   :  { %3701 = vmatpush3.msra.mxu1 %v4567_v62 }
 0xba4   :  { %3702 = vmatprep.subr.mxu1 %v4042_v1 }
 0xba5   :  { %3703 = vmatpush3.msra.mxu1 %v4576_v63 }
 0xba6   :  { %3726 = vmatprep.subr.mxu1 %v1916_v46 }
 0xc56   :  { %v1655_v42 = vpop.f32.mrf.mxu1 }
 0xc57   :  { %v1659_v43 = vadd.f32 %v1655_v42, %v1585_v41 }
 0xc58   :  { %v3668_v44 = vpop.f32.mrf.mxu1 }
 0xc59   :  { %3982 = vtanh.f32 %v1659_v43 }
 0xc66   :  { %v3983_v45 = vpop.eup %3982 }
 0xc67   :  { %1661 = vst.msk [vmem:[#allocation3 + $0x20] sm:$0xff] %vm173_vm2, %v3983_v45  ;;  %3686 = vmatmul.mubr.msk.f32.vlgmr.msra.gmra.mxu0 %vm173_vm2, %v3983_v45 }
 0xc68   :  { %3708 = vmatpush3.msra.mxu0 %v4518_v17  ;;  %3723 = vmatprep.mubr.msk.f32.mxu0 %vm4043_vm0, %v4042_v1 }
 0xc69   :  { %3709 = vmatprep.subr.mxu0 %v4042_v1 }
 0xc6a   :  { %3710 = vmatpush3.msra.mxu0 %v4524_v57  ;;  %v4769_v57 = vld [vmem:[%s5046_s3 + $0xb8] sm:$0xff] }
 0xc6b   :  { %3711 = vmatprep.subr.mxu0 %v4042_v1 }
 0xc6c   :  { %3712 = vmatpush3.msra.mxu0 %v4531_v58  ;;  %v4775_v58 = vld [vmem:[%s5046_s3 + $0xb0] sm:$0xff] }
 0xc6d   :  { %3713 = vmatprep.subr.mxu0 %v4042_v1 }
 0xc6e   :  { %3714 = vmatpush3.msra.mxu0 %v4540_v59  ;;  %v1905_v56 = vld [vmem:[#allocation3 + $0x20] sm:$0xff]  ;;  %v4782_v59 = vld [vmem:[%s5046_s3 + $0xa8] sm:$0xff] }
 0xc6f   :  { %3715 = vmatprep.subr.mxu0 %v4042_v1 }
 0xc70   :  { %3716 = vmatpush3.msra.mxu0 %v4549_v60  ;;  %v4789_v60 = vld [vmem:[%s5046_s3 + $0xa0] sm:$0xff] }
 0xc71   :  { %3717 = vmatprep.subr.mxu0 %v4042_v1 }
 0xc72   :  { %3718 = vmatpush3.msra.mxu0 %v4558_v61  ;;  %v4796_v61 = vld [vmem:[%s5046_s3 + $0x98] sm:$0xff] }
 0xc73   :  { %3719 = vmatprep.subr.mxu0 %v4042_v1 }
 0xc74   :  { %3720 = vmatpush3.msra.mxu0 %v4567_v62  ;;  %v4803_v62 = vld [vmem:[%s5046_s3 + $0x90] sm:$0xff] }
 0xc75   :  { %3721 = vmatprep.subr.mxu0 %v4042_v1 }
 0xc76   :  { %3722 = vmatpush3.msra.mxu0 %v4576_v63  ;;  %v4810_v63 = vld [vmem:[%s5046_s3 + $0x88] sm:$0xff] }
 0xc77   :  { %3754 = vmatprep.subr.mxu0 %v4042_v1 }
 0xd27   :  { %v1732_v48 = vpop.f32.mrf.mxu0 }
 0xd28   :  { %v1736_v49 = vadd.f32 %v1732_v48, %v1662_v47 }
 0xd29   :  { %v3687_v50 = vpop.f32.mrf.mxu0 }
 0xd2a   :  { %3984 = vtanh.f32 %v1736_v49  ;;  %v1899_v49 = vld [vmem:[#allocation2 + $0xc0] sm:$0xff] }
 0xd37   :  { %v3985_v51 = vpop.eup %3984 }
 0xd38   :  { %1738 = vst.msk [vmem:[#allocation3 + $0x28] sm:$0xff] %vm173_vm2, %v3985_v51  ;;  %3705 = vmatmul.mubr.msk.f32.vlgmr.msra.gmra.mxu1 %vm173_vm2, %v3985_v51 }
 0xd39   :  { %3727 = vmatpush3.msra.mxu1 %v1916_v46  ;;  %3742 = vmatprep.mubr.msk.f32.mxu1 %vm173_vm2, %v1901_v53 }
 0xd3a   :  { %3728 = vmatprep.subr.mxu1 %v1915_v52 }
 0xd3b   :  { %3729 = vmatpush3.msra.mxu1 %v1915_v52 }
 0xd3c   :  { %3730 = vmatprep.subr.mxu1 %v1914_v4 }
 0xd3d   :  { %3731 = vmatpush3.msra.mxu1 %v1914_v4 }
 0xd3e   :  { %3732 = vmatprep.subr.mxu1 %v1913_v6 }
 0xd3f   :  { %3733 = vmatpush3.msra.mxu1 %v1913_v6  ;;  %v1906_v17 = vld [vmem:[#allocation3 + $0x28] sm:$0xff] }
 0xd40   :  { %3734 = vmatprep.subr.mxu1 %v1912_v8 }
 0xd41   :  { %3735 = vmatpush3.msra.mxu1 %v1912_v8 }
 0xd42   :  { %3736 = vmatprep.subr.mxu1 %v1911_v10 }
 0xd43   :  { %3737 = vmatpush3.msra.mxu1 %v1911_v10 }
 0xd44   :  { %3738 = vmatprep.subr.mxu1 %v1910_v13 }
 0xd45   :  { %3739 = vmatpush3.msra.mxu1 %v1910_v13 }
 0xd46   :  { %3740 = vmatprep.subr.mxu1 %v1909_v14 }
 0xd47   :  { %3741 = vmatpush3.msra.mxu1 %v1909_v14 }
 0xd48   :  { %3743 = vmatmul.mubr.msk.f32.vlgmr.msra.gmra.mxu1 %vm173_vm2, %v1902_v54  ;;  %3773 = vmatprep.subr.mxu1 %v4042_v1 }
 0xd49   :  { %3745 = vmatprep.mubr.msk.f32.mxu1 %vm173_vm2, %v1903_v16  ;;  %3774 = vmatpush3.msra.mxu1 %v4769_v57 }
 0xd4a   :  { %3775 = vmatprep.subr.mxu1 %v4042_v1 }
 0xd4b   :  { %3776 = vmatpush3.msra.mxu1 %v4775_v58 }
 0xd4c   :  { %3746 = vmatmul.mubr.msk.f32.gmra.mxu1 %vm173_vm2, %v1904_v55  ;;  %3777 = vmatprep.subr.mxu1 %v4042_v1 }
 0xd4d   :  { %3748 = vmatprep.mubr.msk.f32.mxu1 %vm173_vm2, %v1905_v56  ;;  %3778 = vmatpush3.msra.mxu1 %v4782_v59 }
 0xd4e   :  { %3779 = vmatprep.subr.mxu1 %v4042_v1 }
 0xd4f   :  { %3780 = vmatpush3.msra.mxu1 %v4789_v60 }
 0xd50   :  { %3749 = vmatmul.mubr.msk.f32.gmra.mxu1 %vm173_vm2, %v1906_v17  ;;  %3781 = vmatprep.subr.mxu1 %v4042_v1 }
 0xd51   :  { %3782 = vmatpush3.msra.mxu1 %v4796_v61 }
 0xd52   :  { %3783 = vmatprep.subr.mxu1 %v4042_v1 }
 0xd53   :  { %3784 = vmatpush3.msra.mxu1 %v4803_v62 }
 0xd54   :  { %3785 = vmatprep.subr.mxu1 %v4042_v1 }
 0xd55   :  { %3786 = vmatpush3.msra.mxu1 %v4810_v63 }
 0xd56   :  { %3787 = vmatprep.subr.mxu1 %v4042_v1 }
 0xd57   :  { %3788 = vmatpush3.msra.mxu1 %v4817_v0 }
 0xd58   :  { %3811 = vmatprep.subr.mxu1 %v4042_v1 }
 0xdf8   :  { %v1809_v3 = vpop.f32.mrf.mxu1 }
 0xdf9   :  { %v1813_v5 = vadd.f32 %v1809_v3, %v1739_v2 }
 0xdfa   :  { %v3706_v11 = vpop.f32.mrf.mxu1 }
 0xdfb   :  { %3986 = vtanh.f32 %v1813_v5 }
 0xe08   :  { %v3987_v12 = vpop.eup %3986  ;;  %v3744_v18 = vpop.f32.mrf.mxu1 }
 0xe09   :  { %1815 = vst.msk [vmem:[#allocation3 + $0x30] sm:$0xff] %vm173_vm2, %v3987_v12  ;;  %v2047_v19 = vadd.f32 %v3744_v18, %v1894_v15  ;;  %3724 = vmatmul.mubr.msk.f32.vlgmr.msra.gmra.mxu0 %vm173_vm2, %v3987_v12 }
 0xe0a   :  { %v2007_v21 = vpop.f32.mrf.mxu1  ;;  %3755 = vmatpush3.msra.mxu0 %v4769_v57  ;;  %3770 = vmatprep.mubr.msk.f32.mxu0 %vm4043_vm0, %v4042_v1 }
 0xe0b   :  { %2055 = vst.msk [vmem:[#allocation2 + $0x98] sm:$0xff] %vm173_vm2, %v2047_v19  ;;  %v2046_v22 = vadd.f32 %v2007_v21, %v1893_v20  ;;  %3756 = vmatprep.subr.mxu0 %v4042_v1 }
 0xe0c   :  { %v3747_v24 = vpop.f32.mrf.mxu1  ;;  %3757 = vmatpush3.msra.mxu0 %v4775_v58 }
 0xe0d   :  { %2054 = vst.msk [vmem:[#allocation2 + $0x90] sm:$0xff] %vm173_vm2, %v2046_v22  ;;  %v2049_v25 = vadd.f32 %v3747_v24, %v1896_v23  ;;  %3758 = vmatprep.subr.mxu0 %v4042_v1 }
 0xe0e   :  { %v2017_v27 = vpop.f32.mrf.mxu1  ;;  %3759 = vmatpush3.msra.mxu0 %v4782_v59 }
 0xe0f   :  { %2057 = vst.msk [vmem:[#allocation2 + $0xa8] sm:$0xff] %vm173_vm2, %v2049_v25  ;;  %v2048_v28 = vadd.f32 %v2017_v27, %v1895_v26  ;;  %3760 = vmatprep.subr.mxu0 %v4042_v1 }
 0xe10   :  { %v3750_v30 = vpop.f32.mrf.mxu1  ;;  %3761 = vmatpush3.msra.mxu0 %v4789_v60  ;;  %v1907_v31 = vld [vmem:[#allocation3 + $0x30] sm:$0xff] }
 0xe11   :  { %2056 = vst.msk [vmem:[#allocation2 + $0xa0] sm:$0xff] %vm173_vm2, %v2048_v28  ;;  %v2051_v32 = vadd.f32 %v3750_v30, %v1898_v29  ;;  %3762 = vmatprep.subr.mxu0 %v4042_v1  ;;  %3751 = vmatprep.mubr.msk.f32.mxu1 %vm173_vm2, %v1907_v31 }
 0xe12   :  { %v2027_v34 = vpop.f32.mrf.mxu1  ;;  %3763 = vmatpush3.msra.mxu0 %v4796_v61  ;;  %v2144_v52 = vld [vmem:[#allocation2 + $0x98] sm:$0xff] }
 0xe13   :  { %2059 = vst.msk [vmem:[#allocation2 + $0xb8] sm:$0xff] %vm173_vm2, %v2051_v32  ;;  %v2050_v35 = vadd.f32 %v2027_v34, %v1897_v33  ;;  %3764 = vmatprep.subr.mxu0 %v4042_v1  ;;  %v2806_v33 = vld [vmem:[%s5047_s4 + $0x38] sm:$0xff]  ;;  %v2805_v34 = vld [vmem:[%s5047_s4 + $0x30] sm:$0xff] }
 0xe14   :  { %3765 = vmatpush3.msra.mxu0 %v4803_v62  ;;  %v2070_v40 = vld [vmem:[#allocation2 + $0x90] sm:$0xff] }
 0xe15   :  { %2058 = vst.msk [vmem:[#allocation2 + $0xb0] sm:$0xff] %vm173_vm2, %v2050_v35  ;;  %3766 = vmatprep.subr.mxu0 %v4042_v1  ;;  %v2804_v35 = vld [vmem:[%s5047_s4 + $0x28] sm:$0xff] }
 0xe16   :  { %3767 = vmatpush3.msra.mxu0 %v4810_v63  ;;  %v2296_v55 = vld [vmem:[#allocation2 + $0xa8] sm:$0xff] }
 0xe17   :  { %3768 = vmatprep.subr.mxu0 %v4042_v1 }
 0xe18   :  { %3769 = vmatpush3.msra.mxu0 %v4817_v0  ;;  %v2220_v10 = vld [vmem:[#allocation2 + $0xa0] sm:$0xff] }
 0xe19   :  { %3771 = vmatmul.mubr.msk.f32.vlgmr.msra.gmra.mxu0 %vm173_vm2, %v4591_v9  ;;  %3792 = vmatprep.subr.mxu0 %v4042_v1  ;;  %v1816_v9 = vld [vmem:[#allocation2 + $0x88] sm:$0xff] }
 0xe1a   :  { %3793 = vmatpush3.msra.mxu0 %v4769_v57  ;;  %3808 = vmatprep.mubr.msk.f32.mxu0 %vm4043_vm0, %v4042_v1  ;;  %v2448_v19 = vld [vmem:[#allocation2 + $0xb8] sm:$0xff] }
 0xe1b   :  { %3794 = vmatprep.subr.mxu0 %v4042_v1 }
 0xe1c   :  { %3795 = vmatpush3.msra.mxu0 %v4775_v58  ;;  %v2372_v5 = vld [vmem:[#allocation2 + $0xb0] sm:$0xff] }
 0xe1d   :  { %3796 = vmatprep.subr.mxu0 %v4042_v1 }
 0xe1e   :  { %3797 = vmatpush3.msra.mxu0 %v4782_v59 }
 0xe1f   :  { %3798 = vmatprep.subr.mxu0 %v4042_v1 }
 0xe20   :  { %3799 = vmatpush3.msra.mxu0 %v4789_v60 }
 0xe21   :  { %3800 = vmatprep.subr.mxu0 %v4042_v1 }
 0xe22   :  { %3801 = vmatpush3.msra.mxu0 %v4796_v61 }
 0xe23   :  { %3802 = vmatprep.subr.mxu0 %v4042_v1 }
 0xe24   :  { %3803 = vmatpush3.msra.mxu0 %v4803_v62 }
 0xe25   :  { %3804 = vmatprep.subr.mxu0 %v4042_v1 }
 0xe26   :  { %3805 = vmatpush3.msra.mxu0 %v4810_v63 }
 0xe27   :  { %3806 = vmatprep.subr.mxu0 %v4042_v1 }
 0xe28   :  { %3807 = vmatpush3.msra.mxu0 %v4817_v0 }
 0xe29   :  { %3830 = vmatprep.subr.mxu0 %v4042_v1 }
 0xec9   :  { %v1886_v36 = vpop.f32.mrf.mxu0 }
 0xeca   :  { %v1890_v37 = vadd.f32 %v1886_v36, %v1816_v9  ;;  %v2803_v9 = vld [vmem:[%s5047_s4 + $0x20] sm:$0xff]  ;;  %v2802_v36 = vld [vmem:[%s5047_s4 + $0x18] sm:$0xff] }
 0xecb   :  { %v3725_v38 = vpop.f32.mrf.mxu0 }
 0xecc   :  { %3988 = vtanh.f32 %v1890_v37  ;;  %v2801_v37 = vld [vmem:[%s5047_s4 + $0x10] sm:$0xff]  ;;  %v2800_v38 = vld [vmem:[%s5047_s4 + $0x8] sm:$0xff] }
 0xed9   :  { %v3989_v39 = vpop.eup %3988  ;;  %v2137_v41 = vpop.f32.mrf.mxu0 }
 0xeda   :  { %1892 = vst.msk [vmem:[#allocation3 + $0x38] sm:$0xff] %vm173_vm2, %v3989_v39  ;;  %v2141_v42 = vadd.f32 %v2137_v41, %v2070_v40  ;;  %v2676_v39 = vld [vmem:[#allocation2 + $0xd0] sm:$0xff] }
 0xedb   :  { %v3772_v43 = vpop.f32.mrf.mxu0 }
 0xedc   :  { %3990 = vtanh.f32 %v2141_v42 }
 0xee1   :  { %v1908_v44 = vld [vmem:[#allocation3 + $0x38] sm:$0xff] }
 0xee2   :  { %3752 = vmatmul.mubr.msk.f32.gmra.mxu1 %vm173_vm2, %v1908_v44 }
 0xee3   :  { %3789 = vmatprep.mubr.msk.f32.mxu1 %vm4043_vm0, %v4042_v1 }
 0xee9   :  { %v3991_v45 = vpop.eup %3990 }
 0xeea   :  { %v2143_v46 = vsel %vm581_vm3, %v3991_v45, %v4587_v7  ;;  %v1900_v7 = vld [vmem:[#allocation2 + $0xc8] sm:$0xff] }
 0xeeb   :  { %3790 = vmatmul.mubr.msk.f32.vlgmr.msra.gmra.mxu1 %vm173_vm2, %v2143_v46 }
 0xeec   :  { %3812 = vmatpush3.msra.mxu1 %v4769_v57  ;;  %3827 = vmatprep.mubr.msk.f32.mxu1 %vm4043_vm0, %v4042_v1 }
 0xeed   :  { %3813 = vmatprep.subr.mxu1 %v4042_v1 }
 0xeee   :  { %3814 = vmatpush3.msra.mxu1 %v4775_v58 }
 0xeef   :  { %3815 = vmatprep.subr.mxu1 %v4042_v1 }
 0xef0   :  { %3816 = vmatpush3.msra.mxu1 %v4782_v59 }
 0xef1   :  { %3817 = vmatprep.subr.mxu1 %v4042_v1 }
 0xef2   :  { %3818 = vmatpush3.msra.mxu1 %v4789_v60 }
 0xef3   :  { %3819 = vmatprep.subr.mxu1 %v4042_v1 }
 0xef4   :  { %3820 = vmatpush3.msra.mxu1 %v4796_v61 }
 0xef5   :  { %3821 = vmatprep.subr.mxu1 %v4042_v1 }
 0xef6   :  { %3822 = vmatpush3.msra.mxu1 %v4803_v62 }
 0xef7   :  { %3823 = vmatprep.subr.mxu1 %v4042_v1 }
 0xef8   :  { %3824 = vmatpush3.msra.mxu1 %v4810_v63 }
 0xef9   :  { %3825 = vmatprep.subr.mxu1 %v4042_v1 }
 0xefa   :  { %3826 = vmatpush3.msra.mxu1 %v4817_v0 }
 0xefb   :  { %3849 = vmatprep.subr.mxu1 %v4042_v1 }
 0xfa2   :  { %v3753_v47 = vpop.f32.mrf.mxu1 }
 0xfa3   :  { %v2053_v48 = vadd.f32 %v3753_v47, %v1900_v7 }
 0xfa4   :  { %v2037_v50 = vpop.f32.mrf.mxu1 }
 0xfa5   :  { %2061 = vst.msk [vmem:[#allocation2 + $0xc8] sm:$0xff] %vm173_vm2, %v2053_v48  ;;  %v2052_v51 = vadd.f32 %v2037_v50, %v1899_v49 }
 0xfa7   :  { %2060 = vst.msk [vmem:[#allocation2 + $0xc0] sm:$0xff] %vm173_vm2, %v2052_v51 }
 0xfab   :  { %v2214_v53 = vpop.f32.mrf.mxu1 }
 0xfac   :  { %v2218_v4 = vadd.f32 %v2214_v53, %v2144_v52  ;;  %v2600_v28 = vld [vmem:[#allocation2 + $0xc8] sm:$0xff] }
 0xfad   :  { %v3791_v6 = vpop.f32.mrf.mxu1 }
 0xfae   :  { %3992 = vtanh.f32 %v2218_v4 }
 0xfbb   :  { %v3993_v8 = vpop.eup %3992 }
 0xfbc   :  { %3809 = vmatmul.mubr.msk.f32.vlgmr.msra.gmra.mxu0 %vm173_vm2, %v3993_v8 }
 0xfbd   :  { %3831 = vmatpush3.msra.mxu0 %v4769_v57  ;;  %3846 = vmatprep.mubr.msk.f32.mxu0 %vm4043_vm0, %v4042_v1 }
 0xfbe   :  { %3832 = vmatprep.subr.mxu0 %v4042_v1 }
 0xfbf   :  { %3833 = vmatpush3.msra.mxu0 %v4775_v58 }
 0xfc0   :  { %3834 = vmatprep.subr.mxu0 %v4042_v1 }
 0xfc1   :  { %3835 = vmatpush3.msra.mxu0 %v4782_v59 }
 0xfc2   :  { %3836 = vmatprep.subr.mxu0 %v4042_v1 }
 0xfc3   :  { %3837 = vmatpush3.msra.mxu0 %v4789_v60 }
 0xfc4   :  { %3838 = vmatprep.subr.mxu0 %v4042_v1 }
 0xfc5   :  { %3839 = vmatpush3.msra.mxu0 %v4796_v61 }
 0xfc6   :  { %3840 = vmatprep.subr.mxu0 %v4042_v1 }
 0xfc7   :  { %3841 = vmatpush3.msra.mxu0 %v4803_v62 }
 0xfc8   :  { %3842 = vmatprep.subr.mxu0 %v4042_v1 }
 0xfc9   :  { %3843 = vmatpush3.msra.mxu0 %v4810_v63 }
 0xfca   :  { %3844 = vmatprep.subr.mxu0 %v4042_v1 }
 0xfcb   :  { %3845 = vmatpush3.msra.mxu0 %v4817_v0 }
 0xfcc   :  { %3868 = vmatprep.subr.mxu0 %v4042_v1 }
0x107c   :  { %v2290_v13 = vpop.f32.mrf.mxu0 }
0x107d   :  { %v2294_v14 = vadd.f32 %v2290_v13, %v2220_v10 }
0x107e   :  { %v3810_v54 = vpop.f32.mrf.mxu0 }
0x107f   :  { %3994 = vtanh.f32 %v2294_v14 }
0x108c   :  { %v3995_v16 = vpop.eup %3994 }
0x108d   :  { %3828 = vmatmul.mubr.msk.f32.vlgmr.msra.gmra.mxu1 %vm173_vm2, %v3995_v16  ;;  %v2799_v16 = vld [vmem:[%s5047_s4] sm:$0xff]  ;;  %s4046_s4 = smov 125  }
0x108e   :  { %3850 = vmatpush3.msra.mxu1 %v4769_v57  ;;  %3865 = vmatprep.mubr.msk.f32.mxu1 %vm4043_vm0, %v4042_v1 }
0x108f   :  { %3851 = vmatprep.subr.mxu1 %v4042_v1 }
0x1090   :  { %3852 = vmatpush3.msra.mxu1 %v4775_v58 }
0x1091   :  { %3853 = vmatprep.subr.mxu1 %v4042_v1 }
0x1092   :  { %3854 = vmatpush3.msra.mxu1 %v4782_v59 }
0x1093   :  { %3855 = vmatprep.subr.mxu1 %v4042_v1 }
0x1094   :  { %3856 = vmatpush3.msra.mxu1 %v4789_v60 }
0x1095   :  { %3857 = vmatprep.subr.mxu1 %v4042_v1 }
0x1096   :  { %3858 = vmatpush3.msra.mxu1 %v4796_v61 }
0x1097   :  { %3859 = vmatprep.subr.mxu1 %v4042_v1 }
0x1098   :  { %3860 = vmatpush3.msra.mxu1 %v4803_v62 }
0x1099   :  { %3861 = vmatprep.subr.mxu1 %v4042_v1 }
0x109a   :  { %3862 = vmatpush3.msra.mxu1 %v4810_v63 }
0x109b   :  { %3863 = vmatprep.subr.mxu1 %v4042_v1 }
0x109c   :  { %3864 = vmatpush3.msra.mxu1 %v4817_v0 }
0x109d   :  { %3887 = vmatprep.subr.mxu1 %v4042_v1 }
0x114d   :  { %v2366_v56 = vpop.f32.mrf.mxu1 }
0x114e   :  { %v2370_v17 = vadd.f32 %v2366_v56, %v2296_v55 }
0x114f   :  { %v3829_v2 = vpop.f32.mrf.mxu1 }
0x1150   :  { %3996 = vtanh.f32 %v2370_v17 }
0x115d   :  { %v3997_v3 = vpop.eup %3996 }
0x115e   :  { %3847 = vmatmul.mubr.msk.f32.vlgmr.msra.gmra.mxu0 %vm173_vm2, %v3997_v3 }
0x115f   :  { %3869 = vmatpush3.msra.mxu0 %v4769_v57  ;;  %3884 = vmatprep.mubr.msk.f32.mxu0 %vm4043_vm0, %v4042_v1 }
0x1160   :  { %3870 = vmatprep.subr.mxu0 %v4042_v1 }
0x1161   :  { %3871 = vmatpush3.msra.mxu0 %v4775_v58 }
0x1162   :  { %3872 = vmatprep.subr.mxu0 %v4042_v1 }
0x1163   :  { %3873 = vmatpush3.msra.mxu0 %v4782_v59 }
0x1164   :  { %3874 = vmatprep.subr.mxu0 %v4042_v1 }
0x1165   :  { %3875 = vmatpush3.msra.mxu0 %v4789_v60 }
0x1166   :  { %3876 = vmatprep.subr.mxu0 %v4042_v1 }
0x1167   :  { %3877 = vmatpush3.msra.mxu0 %v4796_v61 }
0x1168   :  { %3878 = vmatprep.subr.mxu0 %v4042_v1 }
0x1169   :  { %3879 = vmatpush3.msra.mxu0 %v4803_v62 }
0x116a   :  { %3880 = vmatprep.subr.mxu0 %v4042_v1 }
0x116b   :  { %3881 = vmatpush3.msra.mxu0 %v4810_v63 }
0x116c   :  { %3882 = vmatprep.subr.mxu0 %v4042_v1 }
0x116d   :  { %3883 = vmatpush3.msra.mxu0 %v4817_v0 }
0x116e   :  { %3906 = vmatprep.subr.mxu0 %v4042_v1 }
0x121e   :  { %v2442_v11 = vpop.f32.mrf.mxu0 }
0x121f   :  { %v2446_v12 = vadd.f32 %v2442_v11, %v2372_v5 }
0x1220   :  { %v3848_v15 = vpop.f32.mrf.mxu0 }
0x1221   :  { %3998 = vtanh.f32 %v2446_v12 }
0x122e   :  { %v3999_v18 = vpop.eup %3998 }
0x122f   :  { %3866 = vmatmul.mubr.msk.f32.vlgmr.msra.gmra.mxu1 %vm173_vm2, %v3999_v18 }
0x1230   :  { %3888 = vmatpush3.msra.mxu1 %v4769_v57  ;;  %3903 = vmatprep.mubr.msk.f32.mxu1 %vm4043_vm0, %v4042_v1 }
0x1231   :  { %3889 = vmatprep.subr.mxu1 %v4042_v1 }
0x1232   :  { %3890 = vmatpush3.msra.mxu1 %v4775_v58 }
0x1233   :  { %3891 = vmatprep.subr.mxu1 %v4042_v1 }
0x1234   :  { %3892 = vmatpush3.msra.mxu1 %v4782_v59 }
0x1235   :  { %3893 = vmatprep.subr.mxu1 %v4042_v1 }
0x1236   :  { %3894 = vmatpush3.msra.mxu1 %v4789_v60 }
0x1237   :  { %3895 = vmatprep.subr.mxu1 %v4042_v1 }
0x1238   :  { %3896 = vmatpush3.msra.mxu1 %v4796_v61 }
0x1239   :  { %3897 = vmatprep.subr.mxu1 %v4042_v1 }
0x123a   :  { %3898 = vmatpush3.msra.mxu1 %v4803_v62 }
0x123b   :  { %3899 = vmatprep.subr.mxu1 %v4042_v1 }
0x123c   :  { %3900 = vmatpush3.msra.mxu1 %v4810_v63 }
0x123d   :  { %3901 = vmatprep.subr.mxu1 %v4042_v1 }
0x123e   :  { %3902 = vmatpush3.msra.mxu1 %v4817_v0 }
0x123f   :  { %3925 = vmatprep.subr.mxu1 %v4042_v1 }
0x12ef   :  { %v2518_v20 = vpop.f32.mrf.mxu1 }
0x12f0   :  { %v2522_v21 = vadd.f32 %v2518_v20, %v2448_v19 }
0x12f1   :  { %v3867_v22 = vpop.f32.mrf.mxu1 }
0x12f2   :  { %4000 = vtanh.f32 %v2522_v21 }
0x12ff   :  { %v4001_v23 = vpop.eup %4000 }
0x1300   :  { %3885 = vmatmul.mubr.msk.f32.vlgmr.msra.gmra.mxu0 %vm173_vm2, %v4001_v23 }
0x1301   :  { %3907 = vmatpush3.msra.mxu0 %v4769_v57  ;;  %3922 = vmatprep.mubr.msk.f32.mxu0 %vm4043_vm0, %v4042_v1  ;;  %v2524_v57 = vld [vmem:[#allocation2 + $0xc0] sm:$0xff] }
0x1302   :  { %3908 = vmatprep.subr.mxu0 %v4042_v1 }
0x1303   :  { %3909 = vmatpush3.msra.mxu0 %v4775_v58 }
0x1304   :  { %3910 = vmatprep.subr.mxu0 %v4042_v1 }
0x1305   :  { %3911 = vmatpush3.msra.mxu0 %v4782_v59 }
0x1306   :  { %3912 = vmatprep.subr.mxu0 %v4042_v1 }
0x1307   :  { %3913 = vmatpush3.msra.mxu0 %v4789_v60 }
0x1308   :  { %3914 = vmatprep.subr.mxu0 %v4042_v1 }
0x1309   :  { %3915 = vmatpush3.msra.mxu0 %v4796_v61  ;;  %v2776_v61 = vlaneseq }
0x130a   :  { %3916 = vmatprep.subr.mxu0 %v4042_v1 }
0x130b   :  { %3917 = vmatpush3.msra.mxu0 %v4803_v62  ;;  %v4993_v62 = vshrl.u32 %v2776_v61, 7 }
0x130c   :  { %3918 = vmatprep.subr.mxu0 %v4042_v1 }
0x130d   :  { %3919 = vmatpush3.msra.mxu0 %v4810_v63  ;;  %v4998_v63 = vld [vmem:[%s5048_s5] sm:$0x7]  ;;  %v2787_v25 = vsub.s32 1, %v4993_v62  ;;  %v2809_v15 = vsub.s32 2, %v4993_v62 }
0x130e   :  { %3920 = vmatprep.subr.mxu0 %v4042_v1 }
0x130f   :  { %3921 = vmatpush3.msra.mxu0 %v4817_v0  ;;  %v2778_v0 = vsub.s32 0, %v4993_v62  ;;  %v2788_v27 = vrot.slane %v4998_v63, %v2787_v25  ;;  %v2810_v18 = vrot.slane %v4998_v63, %v2809_v15 }
0x1311   :  { %v2779_v26 = vrot.slane %v4998_v63, %v2778_v0 }
0x1313   :  { %2781 = vrot.lane.b32.xlu0 %v2779_v26, %s4044_s0 }
0x1317   :  { %2790 = vrot.lane.b32.xlu0 %v2788_v27, %s4044_s0 }
0x1385   :  { %v2782_v55 = vpop.permute.xlu0 %2781 }
0x1389   :  { %v2791_v2 = vpop.permute.xlu0 %2790 }
0x13c0   :  { %v2594_v58 = vpop.f32.mrf.mxu0 }
0x13c1   :  { %v2598_v59 = vadd.f32 %v2594_v58, %v2524_v57 }
0x13c2   :  { %v3886_v60 = vpop.f32.mrf.mxu0 }
0x13c3   :  { %4002 = vtanh.f32 %v2598_v59 }
0x13d0   :  { %v4003_v24 = vpop.eup %4002 }
0x13d1   :  { %3904 = vmatmul.mubr.msk.f32.vlgmr.msra.gmra.mxu1 %vm173_vm2, %v4003_v24 }
0x13d2   :  { %3941 = vmatprep.mubr.msk.f32.mxu1 %vm4043_vm0, %v4042_v1  ;;  %3926 = vmatpush3.msra.mxu1 %v2806_v33 }
0x13d3   :  { %3927 = vmatprep.subr.mxu1 %v4042_v1 }
0x13d4   :  { %3928 = vmatpush3.msra.mxu1 %v2805_v34 }
0x13d5   :  { %3929 = vmatprep.subr.mxu1 %v4042_v1 }
0x13d6   :  { %3930 = vmatpush3.msra.mxu1 %v2804_v35 }
0x13d7   :  { %3931 = vmatprep.subr.mxu1 %v4042_v1 }
0x13d8   :  { %3932 = vmatpush3.msra.mxu1 %v2803_v9 }
0x13d9   :  { %3933 = vmatprep.subr.mxu1 %v4042_v1 }
0x13da   :  { %3934 = vmatpush3.msra.mxu1 %v2802_v36 }
0x13db   :  { %3935 = vmatprep.subr.mxu1 %v4042_v1 }
0x13dc   :  { %3936 = vmatpush3.msra.mxu1 %v2801_v37 }
0x13dd   :  { %3937 = vmatprep.subr.mxu1 %v4042_v1 }
0x13de   :  { %3938 = vmatpush3.msra.mxu1 %v2800_v38 }
0x13df   :  { %3939 = vmatprep.subr.mxu1 %v4042_v1 }
0x13e0   :  { %3940 = vmatpush3.msra.mxu1 %v2799_v16 }
0x1491   :  { %v2670_v29 = vpop.f32.mrf.mxu1 }
0x1492   :  { %v2674_v30 = vadd.f32 %v2670_v29, %v2600_v28 }
0x1493   :  { %v3905_v31 = vpop.f32.mrf.mxu1 }
0x1494   :  { %4004 = vtanh.f32 %v2674_v30 }
0x14a1   :  { %v4005_v32 = vpop.eup %4004 }
0x14a2   :  { %3923 = vmatmul.mubr.msk.f32.vlgmr.msra.gmra.mxu0 %vm173_vm2, %v4005_v32 }
0x1562   :  { %v2746_v40 = vpop.f32.mrf.mxu0 }
0x1563   :  { %v2750_v41 = vadd.f32 %v2746_v40, %v2676_v39 }
0x1564   :  { %v3924_v42 = vpop.f32.mrf.mxu0 }
0x1565   :  { %4006 = vtanh.f32 %v2750_v41 }
0x1572   :  { %v4007_v43 = vpop.eup %4006 }
0x1573   :  { %v2754_v44 = vsel %vm2753_vm4, %v4007_v43, 0.0 }
0x1574   :  { %v2755_v45 = vrot.slane %v2754_v44, 4 }
0x1576   :  { %v2756_v46 = vadd.f32 %v2755_v45, %v2754_v44 }
0x1578   :  { %v2757_v7 = vrot.slane %v2756_v46, 2 }
0x157a   :  { %v2758_v47 = vadd.f32 %v2757_v7, %v2756_v46 }
0x157c   :  { %v2759_v48 = vrot.slane %v2758_v47, 1 }
0x157e   :  { %v2760_v49 = vadd.f32 %v2759_v48, %v2758_v47 }
0x1580   :  { %v2762_v50 = vmul.f32 0.5, %v2760_v49 }
0x1582   :  { %v2763_v51 = vsub.f32 %v4007_v43, %v2762_v50 }
0x1584   :  { %v2764_v52 = vmul.f32 %v2763_v51, %v2763_v51 }
0x1586   :  { %v2765_v53 = vsel %vm2753_vm4, %v2764_v52, 0.0 }
0x1587   :  { %v2766_v4 = vrot.slane %v2765_v53, 4 }
0x1589   :  { %v2767_v1 = vadd.f32 %v2766_v4, %v2765_v53 }
0x158b   :  { %v2768_v6 = vrot.slane %v2767_v1, 2 }
0x158d   :  { %v2769_v8 = vadd.f32 %v2768_v6, %v2767_v1 }
0x158f   :  { %v2770_v10 = vrot.slane %v2769_v8, 1 }
0x1591   :  { %v2771_v13 = vadd.f32 %v2770_v10, %v2769_v8 }
0x1593   :  { %v2772_v14 = vmul.f32 0.5, %v2771_v13 }
0x1595   :  { %v2773_v54 = vadd.f32 1e-05, %v2772_v14 }
0x1597   :  { %4008 = vrsqrt.f32 %v2773_v54 }
0x15a4   :  { %v4009_v56 = vpop.eup %4008 }
0x15a5   :  { %v2775_v17 = vmul.f32 %v4009_v56, %v2763_v51 }
0x15a7   :  { %v2784_v3 = vmul.f32 %v2782_v55, %v2775_v17 }
0x15a9   :  { %v2793_v5 = vadd.f32 %v2791_v2, %v2784_v3 }
0x15ab   :  { %2795 = vrot.lane.b32.xlu1 %v2793_v5, %s4045_s28 }
0x161d   :  { %v2796_v11 = vpop.permute.xlu1 %2795 }
0x161e   :  { %v2798_v12 = vsel %vm581_vm3, %v2796_v11, %v4007_v43 }
0x161f   :  { %3942 = vmatmul.mubr.msk.f32.vlgmr.msra.gmra.mxu1 %vm173_vm2, %v2798_v12 }
0x16df   :  { %v2880_v19 = vpop.f32.mrf.mxu1 }
0x16e0   :  { %v2881_v20 = vadd.f32 %v2880_v19, %v2810_v18 }
0x16e1   :  { %v3943_v21 = vpop.f32.mrf.mxu1 }
0x16e2   :  { %4010 = vtanh.f32 %v2881_v20  ;;  %v2884_v59 = vsub.f32 0.0, %v2881_v20 }
0x16e4   :  { %v2885_v60 = vmul.f32 1.442695, %v2884_v59 }
0x16ef   :  { %v4011_v22 = vpop.eup %4010 }
0x16f0   :  { %v2891_v23 = vmul.f32 %v4011_v22, %v4011_v22 }
0x16f2   :  { %2893 = vrot.lane.b32.xlu1 %v2891_v23, %s4046_s4 }
0x1764   :  { %v2894_v57 = vpop.permute.xlu1 %2893 }
0x1765   :  { %v2897_v58 = vsel %vm2896_vm5, %v2894_v57, 0.0 }
0x1766   :  { %2898 = vadd.xlane.f32.xlu0 %v2897_v58 }
0x17ef   :  { %v2899_v24 = vpop.xlane.xlu0 %2898 }
0x17f0   :  { %4012 = vrsqrt.f32 %v2899_v24  ;;  %vm2902_vm6 = vcmp.eq.f32.partialorder %v2899_v24, inf  ;;  %v2905_v0 = vand.u32 2147483648, %v2899_v24  ;;  %vm2904_vm7 = vcmp.eq.f32.partialorder %v2899_v24, 0.0 }
0x17f1   :  { %4014 = vpow2.f32 %v2885_v60 }
0x17fd   :  { %v4013_v61 = vpop.eup %4012 }
0x17fe   :  { %v2901_v62 = vmul.f32 %v4013_v61, %v2899_v24  ;;  %v4015_v63 = vpop.eup %4014 }
0x17ff   :  { %v2887_v27 = vadd.f32 1.0, %v4015_v63 }
0x1800   :  { %v2903_v25 = vsel %vm2902_vm6, %v2899_v24, %v2901_v62 }
0x1801   :  { %v2906_v26 = vsel %vm2904_vm7, %v2905_v0, %v2903_v25 }
0x1802   :  { %v2907_v28 = vmax.f32 %v2906_v26, 1e-12 }
0x1804   :  { %4016 = vrcp.f32 %v2907_v28 }
0x1805   :  { %4018 = vrcp.f32 %v2887_v27 }
0x1811   :  { %v4017_v29 = vpop.eup %4016 }
0x1812   :  { %v2909_v30 = vmul.f32 %v4017_v29, %v4011_v22  ;;  %v4019_v31 = vpop.eup %4018 }
0x1814   :  { %v2911_v32 = vsel %vm2910_vm8, %v4019_v31, %v2909_v30 }
0x1815   :  { %2913 = vst.msk [vmem:[#allocation4] sm:$0x3] %vm2912_vm9, %v2911_v32 }
0x1816   :  { %4031 = shalt.err (!%p4028_p4)
}
0x1817   :  { %2923 = dma.vmem_to_hbm [thread:$0]  %s2921_s30, 32, %s5049_s6, [#allocation5]  }
0x1818   :  { %4040 = dma.done.wait [#allocation5], 32  }
0x1819   :  { %4041 = vsyncadd [#allocation5], 4294967264 }
0x181a   :  { %2927 = vsyncpa [#allocation5], 1 }

</bundles_post_ra>
